<compile_context>
chip_gen: v7x
topology: tpu7x:2x2x1
jax: 0.10.0
libtpu: 0.0.40
codegen_flags: <defaults>
</compile_context>

<pallas_src>
import functools

import jax
import jax.numpy as jnp
from jax.experimental import pallas as pl
from jax.experimental.pallas import tpu as pltpu


def _conv2_1d_kernel(p_ref, w2d_ref, b2d_ref, w1d_ref, b1d_ref, o_ref, y_ref,
                     *, T, kt, tcp):
    # p_ref   : (T, CK, Sb)          im2col patches, spatial-minor (lane dense)
    # w2d_ref : (chans, CK)          flattened 2d-conv weights
    # b2d_ref : (chans, 1)
    # w1d_ref : (chans, kt*chans)    flattened temporal weights, (tap, cin) order
    # b1d_ref : (chans, 1)
    # o_ref   : (T, chans, Sb)
    # y_ref   : (T + kt - 1, chans, Sb) f32 scratch: time-padded stage-1 output
    chans = w2d_ref.shape[0]
    Sb = p_ref.shape[-1]
    pad = (kt - 1) // 2  # = 1 for kt == 3

    # ---- stage 1: 2x2 / stride-2 conv as matmul + bias + ReLU --------------
    w2d = w2d_ref[...].astype(jnp.bfloat16)
    b2d = b2d_ref[...]
    for t in range(T):
        acc = jax.lax.dot_general(
            w2d, p_ref[t].astype(jnp.bfloat16),
            dimension_numbers=(((1,), (0,)), ((), ())),
            preferred_element_type=jnp.float32)
        y_ref[pad + t] = jnp.maximum(acc + b2d, 0.0)

    # ---- temporal padding rows ---------------------------------------------
    if tcp:
        # circular: frame before t=0 is t=T-1, frame after t=T-1 is t=0
        y_ref[0] = y_ref[pad + T - 1]
        y_ref[pad + T] = y_ref[pad]
    else:
        y_ref[0] = jnp.zeros((chans, Sb), jnp.float32)
        y_ref[pad + T] = jnp.zeros((chans, Sb), jnp.float32)

    # ---- stage 2: temporal conv as one deep matmul per output frame --------
    w1d = w1d_ref[...].astype(jnp.bfloat16)
    b1d = b1d_ref[...]
    for t in range(T):
        z = jnp.concatenate([y_ref[t + k] for k in range(kt)], axis=0)
        acc = jax.lax.dot_general(
            w1d, z.astype(jnp.bfloat16),
            dimension_numbers=(((1,), (0,)), ((), ())),
            preferred_element_type=jnp.float32)
        o_ref[t] = (acc + b1d).astype(o_ref.dtype)


def _pick_spatial_block(S):
    # Largest lane-dense tile that divides S; fall back to the full extent
    # (legal because a block dim equal to the full array dim is always allowed).
    for cand in (2048, 1024, 512, 256, 128):
        if S % cand == 0:
            return cand
    return S


def conv2_1d_forward(x, params, *, kernel_size=(3, 2, 2), stride=(1, 2, 2),
                     padding=(0, 0, 0), dilation=(1, 1, 1), tcp=True):
    """Forward pass of Conv2_1d.  x: (T, Cin, D1, D2) -> (T, chans, dr1, dr2)."""
    kt, kh, kw = kernel_size
    st, sh, sw = stride

    # Specialised to the module's default configuration (patchify 2d conv +
    # 3-tap temporal conv).  TODO(synk): general overlapping-patch spatial conv
    # (kernel != stride / nonzero spatial padding / dilation) is not implemented.
    assert (kh, kw) == (sh, sw), "spatial kernel must equal spatial stride"
    assert padding[1:] == (0, 0) and dilation == (1, 1, 1)
    assert kt == 3 and st == 1 and padding[0] == 0

    T, Cin, D1, D2 = x.shape
    chans = params["w2d"].shape[0]
    dr1 = (D1 - kh) // sh + 1
    dr2 = (D2 - kw) // sw + 1
    S = dr1 * dr2
    CK = Cin * kh * kw

    # ---- wrapper-side layout plumbing (one pass over x) ---------------------
    # space-to-depth im2col: (T, Cin, D1, D2) -> (T, Cin*kh*kw, dr1*dr2)
    # CK flat order is (cin, ky, kx), matching the OIHW weight reshape below.
    xc = x[:, :, :dr1 * sh, :dr2 * sw]
    patches = xc.reshape(T, Cin, dr1, kh, dr2, kw)
    patches = patches.transpose(0, 1, 3, 5, 2, 4).reshape(T, CK, S)

    w2d = params["w2d"].reshape(chans, CK)                       # (O, CK)
    b2d = params["b2d"].reshape(chans, 1)
    # (O, I, kt) -> (O, kt, I) -> (O, kt*I): tap-major matches the in-kernel concat
    w1d = params["w1d"].transpose(0, 2, 1).reshape(chans, kt * chans)
    b1d = params["b1d"].reshape(chans, 1)

    s_blk = _pick_spatial_block(S)
    grid = (S // s_blk,)

    kernel = functools.partial(_conv2_1d_kernel, T=T, kt=kt, tcp=tcp)

    flops = 2 * T * S * chans * (CK + kt * chans)
    bytes_accessed = 4 * (T * CK * S + T * chans * S
                          + chans * CK + chans * kt * chans + 2 * chans)

    out_flat = pl.pallas_call(
        kernel,
        out_shape=jax.ShapeDtypeStruct((T, chans, S), x.dtype),
        grid_spec=pltpu.PrefetchScalarGridSpec(
            num_scalar_prefetch=0,
            grid=grid,
            in_specs=[
                pl.BlockSpec((T, CK, s_blk), lambda s: (0, 0, s)),       # patches
                pl.BlockSpec((chans, CK), lambda s: (0, 0)),             # w2d
                pl.BlockSpec((chans, 1), lambda s: (0, 0)),              # b2d
                pl.BlockSpec((chans, kt * chans), lambda s: (0, 0)),     # w1d
                pl.BlockSpec((chans, 1), lambda s: (0, 0)),              # b1d
            ],
            out_specs=pl.BlockSpec((T, chans, s_blk), lambda s: (0, 0, s)),
            scratch_shapes=[pltpu.VMEM((T + kt - 1, chans, s_blk), jnp.float32)],
        ),
        compiler_params=pltpu.CompilerParams(
            dimension_semantics=("parallel",)),
        cost_estimate=pl.CostEstimate(
            flops=flops, transcendentals=0, bytes_accessed=bytes_accessed),
    )(patches, w2d, b2d, w1d, b1d)

    return out_flat.reshape(T, chans, dr1, dr2)


def _reference_forward(x, params, *, kernel_size=(3, 2, 2), stride=(1, 2, 2),
                       padding=(0, 0, 0), dilation=(1, 1, 1), tcp=True):
    """Pure-JAX (f32) reference mirroring the PyTorch module."""
    kt = kernel_size[0]
    y = jax.lax.conv_general_dilated(
        x, params["w2d"], window_strides=stride[1:],
        padding=[(padding[1], padding[1]), (padding[2], padding[2])],
        rhs_dilation=dilation[1:],
        dimension_numbers=("NCHW", "OIHW", "NCHW"))
    y = y + params["b2d"][None, :, None, None]
    y = jnp.maximum(y, 0.0)                                  # (T, C, dr1, dr2)
    T, C, dr1, dr2 = y.shape

    seq = jnp.transpose(y, (2, 3, 1, 0)).reshape(dr1 * dr2, C, T)   # (S, C, T)
    if tcp:
        seq_pad = jnp.concatenate(
            [seq[:, :, T - 1:T], seq, seq[:, :, 0:1]], axis=-1)
    else:
        seq_pad = jnp.pad(seq, ((0, 0), (0, 0), (1, 1)))

    outs = []
    for t in range(T):
        acc = params["b1d"][None, :]
        for k in range(kt):
            acc = acc + seq_pad[:, :, t + k] @ params["w1d"][:, :, k].T
        outs.append(acc)                                          # (S, Cout)
    z = jnp.stack(outs, axis=0)                                   # (T, S, Cout)
    z = jnp.transpose(z, (0, 2, 1)).reshape(T, C, dr1, dr2)
    return z


if __name__ == "__main__":
    # Small shapes implied by the module's forward: x is (t, c, d1, d2).
    T, Cin, D1, D2 = 8, 4, 16, 16
    chans = 32
    kernel_size, stride, padding, dilation = (3, 2, 2), (1, 2, 2), (0, 0, 0), (1, 1, 1)
    tcp = True

    key = jax.random.PRNGKey(0)
    ks = jax.random.split(key, 5)

    def uinit(k, shape, fan_in):
        bound = 1.0 / jnp.sqrt(jnp.float32(fan_in))
        return jax.random.uniform(k, shape, jnp.float32, -bound, bound)

    fan2d = Cin * kernel_size[1] * kernel_size[2]
    fan1d = chans * kernel_size[0]
    params = {
        "w2d": uinit(ks[0], (chans, Cin, kernel_size[1], kernel_size[2]), fan2d),
        "b2d": uinit(ks[1], (chans,), fan2d),
        "w1d": uinit(ks[2], (chans, chans, kernel_size[0]), fan1d),
        "b1d": uinit(ks[3], (chans,), fan1d),
    }
    x = jax.random.normal(ks[4], (T, Cin, D1, D2), jnp.float32)

    out = conv2_1d_forward(x, params, kernel_size=kernel_size, stride=stride,
                           padding=padding, dilation=dilation, tcp=tcp)
    out = jax.block_until_ready(out)

    ref = _reference_forward(x, params, kernel_size=kernel_size, stride=stride,
                             padding=padding, dilation=dilation, tcp=tcp)

    dr1, dr2 = D1 // 2, D2 // 2
    assert out.shape == (T, chans, dr1, dr2), out.shape
    # bf16 MXU operands with f32 accumulation -> relaxed (but meaningful) tolerance.
    assert jnp.allclose(out, ref, atol=2e-2, rtol=2e-2), \
        f"mismatch vs reference, max err {float(jnp.max(jnp.abs(out - ref)))}"

    print("KERNEL_OK")
</pallas_src>

<mosaic_0001>
module attributes {stable_mosaic.version = 11 : i64} {
  func.func @_conv2_1d_kernel(%arg0: i32, %arg1: memref<8x16x64xf32, #tpu.memory_space<vmem>>, %arg2: memref<32x16xf32, #tpu.memory_space<vmem>>, %arg3: memref<32x1xf32, #tpu.memory_space<vmem>>, %arg4: memref<32x96xf32, #tpu.memory_space<vmem>>, %arg5: memref<32x1xf32, #tpu.memory_space<vmem>>, %arg6: memref<8x32x64xf32, #tpu.memory_space<vmem>>, %arg7: memref<10x32x64xf32, #tpu.memory_space<vmem>>) attributes {dimension_semantics = [#tpu.dimension_semantics<parallel>], iteration_bounds = array<i64: 1>, scalar_prefetch = 0 : i64, scratch_operands = 1 : i64, tpu.core_type = #tpu.core_type<tc>, window_params = [{transform_indices = @transform_0, window_bounds = array<i64: 8, 16, 64>}, {pipeline_mode = #tpu.pipeline_mode<synchronous>, transform_indices = @transform_1, window_bounds = array<i64: 32, 16>}, {pipeline_mode = #tpu.pipeline_mode<synchronous>, transform_indices = @transform_2, window_bounds = array<i64: 32, 1>}, {pipeline_mode = #tpu.pipeline_mode<synchronous>, transform_indices = @transform_3, window_bounds = array<i64: 32, 96>}, {pipeline_mode = #tpu.pipeline_mode<synchronous>, transform_indices = @transform_4, window_bounds = array<i64: 32, 1>}, {transform_indices = @transform_5, window_bounds = array<i64: 8, 32, 64>}]} {
    %c0 = arith.constant 0 : index
    %c0_0 = arith.constant 0 : index
    %0 = vector.load %arg2[%c0, %c0_0] : memref<32x16xf32, #tpu.memory_space<vmem>>, vector<32x16xf32>
    %1 = arith.truncf %0 : vector<32x16xf32> to vector<32x16xbf16>
    %c0_1 = arith.constant 0 : index
    %c0_2 = arith.constant 0 : index
    %2 = vector.load %arg3[%c0_1, %c0_2] : memref<32x1xf32, #tpu.memory_space<vmem>>, vector<32x1xf32>
    %c0_3 = arith.constant 0 : index
    %c0_4 = arith.constant 0 : index
    %c0_5 = arith.constant 0 : index
    %3 = vector.load %arg1[%c0_3, %c0_4, %c0_5] : memref<8x16x64xf32, #tpu.memory_space<vmem>>, vector<1x16x64xf32>
    %4 = vector.shape_cast %3 : vector<1x16x64xf32> to vector<16x64xf32>
    %5 = arith.truncf %4 : vector<16x64xf32> to vector<16x64xbf16>
    %cst = arith.constant dense<0.000000e+00> : vector<32x64xf32>
    %6 = tpu.matmul %1, %5, %cst {dimension_numbers = #tpu.dot_dimension_numbers<[1], [0], [0], [1], [0, 0, 1, 1], [], []>} : vector<32x16xbf16>, vector<16x64xbf16>, vector<32x64xf32> -> vector<32x64xf32>
    %7 = vector.broadcast %2 : vector<32x1xf32> to vector<32x64xf32>
    %8 = arith.addf %6, %7 : vector<32x64xf32>
    %cst_6 = arith.constant 0.000000e+00 : f32
    %9 = vector.broadcast %cst_6 : f32 to vector<32x64xf32>
    %10 = arith.maximumf %8, %9 : vector<32x64xf32>
    %c1 = arith.constant 1 : index
    %c0_7 = arith.constant 0 : index
    %c0_8 = arith.constant 0 : index
    %11 = vector.load %arg7[%c1, %c0_7, %c0_8] : memref<10x32x64xf32, #tpu.memory_space<vmem>>, vector<1x32x64xf32>
    %12 = vector.shape_cast %11 : vector<1x32x64xf32> to vector<32x64xf32>
    %13 = vector.shape_cast %10 : vector<32x64xf32> to vector<1x32x64xf32>
    tpu.vector_store %arg7[%c1, %c0_7, %c0_8], %13 {strides = array<i32>} : memref<10x32x64xf32, #tpu.memory_space<vmem>>, vector<1x32x64xf32>,
    %c1_9 = arith.constant 1 : index
    %c0_10 = arith.constant 0 : index
    %c0_11 = arith.constant 0 : index
    %14 = vector.load %arg1[%c1_9, %c0_10, %c0_11] : memref<8x16x64xf32, #tpu.memory_space<vmem>>, vector<1x16x64xf32>
    %15 = vector.shape_cast %14 : vector<1x16x64xf32> to vector<16x64xf32>
    %16 = arith.truncf %15 : vector<16x64xf32> to vector<16x64xbf16>
    %cst_12 = arith.constant dense<0.000000e+00> : vector<32x64xf32>
    %17 = tpu.matmul %1, %16, %cst_12 {dimension_numbers = #tpu.dot_dimension_numbers<[1], [0], [0], [1], [0, 0, 1, 1], [], []>} : vector<32x16xbf16>, vector<16x64xbf16>, vector<32x64xf32> -> vector<32x64xf32>
    %18 = vector.broadcast %2 : vector<32x1xf32> to vector<32x64xf32>
    %19 = arith.addf %17, %18 : vector<32x64xf32>
    %cst_13 = arith.constant 0.000000e+00 : f32
    %20 = vector.broadcast %cst_13 : f32 to vector<32x64xf32>
    %21 = arith.maximumf %19, %20 : vector<32x64xf32>
    %c2 = arith.constant 2 : index
    %c0_14 = arith.constant 0 : index
    %c0_15 = arith.constant 0 : index
    %22 = vector.load %arg7[%c2, %c0_14, %c0_15] : memref<10x32x64xf32, #tpu.memory_space<vmem>>, vector<1x32x64xf32>
    %23 = vector.shape_cast %22 : vector<1x32x64xf32> to vector<32x64xf32>
    %24 = vector.shape_cast %21 : vector<32x64xf32> to vector<1x32x64xf32>
    tpu.vector_store %arg7[%c2, %c0_14, %c0_15], %24 {strides = array<i32>} : memref<10x32x64xf32, #tpu.memory_space<vmem>>, vector<1x32x64xf32>,
    %c2_16 = arith.constant 2 : index
    %c0_17 = arith.constant 0 : index
    %c0_18 = arith.constant 0 : index
    %25 = vector.load %arg1[%c2_16, %c0_17, %c0_18] : memref<8x16x64xf32, #tpu.memory_space<vmem>>, vector<1x16x64xf32>
    %26 = vector.shape_cast %25 : vector<1x16x64xf32> to vector<16x64xf32>
    %27 = arith.truncf %26 : vector<16x64xf32> to vector<16x64xbf16>
    %cst_19 = arith.constant dense<0.000000e+00> : vector<32x64xf32>
    %28 = tpu.matmul %1, %27, %cst_19 {dimension_numbers = #tpu.dot_dimension_numbers<[1], [0], [0], [1], [0, 0, 1, 1], [], []>} : vector<32x16xbf16>, vector<16x64xbf16>, vector<32x64xf32> -> vector<32x64xf32>
    %29 = vector.broadcast %2 : vector<32x1xf32> to vector<32x64xf32>
    %30 = arith.addf %28, %29 : vector<32x64xf32>
    %cst_20 = arith.constant 0.000000e+00 : f32
    %31 = vector.broadcast %cst_20 : f32 to vector<32x64xf32>
    %32 = arith.maximumf %30, %31 : vector<32x64xf32>
    %c3 = arith.constant 3 : index
    %c0_21 = arith.constant 0 : index
    %c0_22 = arith.constant 0 : index
    %33 = vector.load %arg7[%c3, %c0_21, %c0_22] : memref<10x32x64xf32, #tpu.memory_space<vmem>>, vector<1x32x64xf32>
    %34 = vector.shape_cast %33 : vector<1x32x64xf32> to vector<32x64xf32>
    %35 = vector.shape_cast %32 : vector<32x64xf32> to vector<1x32x64xf32>
    tpu.vector_store %arg7[%c3, %c0_21, %c0_22], %35 {strides = array<i32>} : memref<10x32x64xf32, #tpu.memory_space<vmem>>, vector<1x32x64xf32>,
    %c3_23 = arith.constant 3 : index
    %c0_24 = arith.constant 0 : index
    %c0_25 = arith.constant 0 : index
    %36 = vector.load %arg1[%c3_23, %c0_24, %c0_25] : memref<8x16x64xf32, #tpu.memory_space<vmem>>, vector<1x16x64xf32>
    %37 = vector.shape_cast %36 : vector<1x16x64xf32> to vector<16x64xf32>
    %38 = arith.truncf %37 : vector<16x64xf32> to vector<16x64xbf16>
    %cst_26 = arith.constant dense<0.000000e+00> : vector<32x64xf32>
    %39 = tpu.matmul %1, %38, %cst_26 {dimension_numbers = #tpu.dot_dimension_numbers<[1], [0], [0], [1], [0, 0, 1, 1], [], []>} : vector<32x16xbf16>, vector<16x64xbf16>, vector<32x64xf32> -> vector<32x64xf32>
    %40 = vector.broadcast %2 : vector<32x1xf32> to vector<32x64xf32>
    %41 = arith.addf %39, %40 : vector<32x64xf32>
    %cst_27 = arith.constant 0.000000e+00 : f32
    %42 = vector.broadcast %cst_27 : f32 to vector<32x64xf32>
    %43 = arith.maximumf %41, %42 : vector<32x64xf32>
    %c4 = arith.constant 4 : index
    %c0_28 = arith.constant 0 : index
    %c0_29 = arith.constant 0 : index
    %44 = vector.load %arg7[%c4, %c0_28, %c0_29] : memref<10x32x64xf32, #tpu.memory_space<vmem>>, vector<1x32x64xf32>
    %45 = vector.shape_cast %44 : vector<1x32x64xf32> to vector<32x64xf32>
    %46 = vector.shape_cast %43 : vector<32x64xf32> to vector<1x32x64xf32>
    tpu.vector_store %arg7[%c4, %c0_28, %c0_29], %46 {strides = array<i32>} : memref<10x32x64xf32, #tpu.memory_space<vmem>>, vector<1x32x64xf32>,
    %c4_30 = arith.constant 4 : index
    %c0_31 = arith.constant 0 : index
    %c0_32 = arith.constant 0 : index
    %47 = vector.load %arg1[%c4_30, %c0_31, %c0_32] : memref<8x16x64xf32, #tpu.memory_space<vmem>>, vector<1x16x64xf32>
    %48 = vector.shape_cast %47 : vector<1x16x64xf32> to vector<16x64xf32>
    %49 = arith.truncf %48 : vector<16x64xf32> to vector<16x64xbf16>
    %cst_33 = arith.constant dense<0.000000e+00> : vector<32x64xf32>
    %50 = tpu.matmul %1, %49, %cst_33 {dimension_numbers = #tpu.dot_dimension_numbers<[1], [0], [0], [1], [0, 0, 1, 1], [], []>} : vector<32x16xbf16>, vector<16x64xbf16>, vector<32x64xf32> -> vector<32x64xf32>
    %51 = vector.broadcast %2 : vector<32x1xf32> to vector<32x64xf32>
    %52 = arith.addf %50, %51 : vector<32x64xf32>
    %cst_34 = arith.constant 0.000000e+00 : f32
    %53 = vector.broadcast %cst_34 : f32 to vector<32x64xf32>
    %54 = arith.maximumf %52, %53 : vector<32x64xf32>
    %c5 = arith.constant 5 : index
    %c0_35 = arith.constant 0 : index
    %c0_36 = arith.constant 0 : index
    %55 = vector.load %arg7[%c5, %c0_35, %c0_36] : memref<10x32x64xf32, #tpu.memory_space<vmem>>, vector<1x32x64xf32>
    %56 = vector.shape_cast %55 : vector<1x32x64xf32> to vector<32x64xf32>
    %57 = vector.shape_cast %54 : vector<32x64xf32> to vector<1x32x64xf32>
    tpu.vector_store %arg7[%c5, %c0_35, %c0_36], %57 {strides = array<i32>} : memref<10x32x64xf32, #tpu.memory_space<vmem>>, vector<1x32x64xf32>,
    %c5_37 = arith.constant 5 : index
    %c0_38 = arith.constant 0 : index
    %c0_39 = arith.constant 0 : index
    %58 = vector.load %arg1[%c5_37, %c0_38, %c0_39] : memref<8x16x64xf32, #tpu.memory_space<vmem>>, vector<1x16x64xf32>
    %59 = vector.shape_cast %58 : vector<1x16x64xf32> to vector<16x64xf32>
    %60 = arith.truncf %59 : vector<16x64xf32> to vector<16x64xbf16>
    %cst_40 = arith.constant dense<0.000000e+00> : vector<32x64xf32>
    %61 = tpu.matmul %1, %60, %cst_40 {dimension_numbers = #tpu.dot_dimension_numbers<[1], [0], [0], [1], [0, 0, 1, 1], [], []>} : vector<32x16xbf16>, vector<16x64xbf16>, vector<32x64xf32> -> vector<32x64xf32>
    %62 = vector.broadcast %2 : vector<32x1xf32> to vector<32x64xf32>
    %63 = arith.addf %61, %62 : vector<32x64xf32>
    %cst_41 = arith.constant 0.000000e+00 : f32
    %64 = vector.broadcast %cst_41 : f32 to vector<32x64xf32>
    %65 = arith.maximumf %63, %64 : vector<32x64xf32>
    %c6 = arith.constant 6 : index
    %c0_42 = arith.constant 0 : index
    %c0_43 = arith.constant 0 : index
    %66 = vector.load %arg7[%c6, %c0_42, %c0_43] : memref<10x32x64xf32, #tpu.memory_space<vmem>>, vector<1x32x64xf32>
    %67 = vector.shape_cast %66 : vector<1x32x64xf32> to vector<32x64xf32>
    %68 = vector.shape_cast %65 : vector<32x64xf32> to vector<1x32x64xf32>
    tpu.vector_store %arg7[%c6, %c0_42, %c0_43], %68 {strides = array<i32>} : memref<10x32x64xf32, #tpu.memory_space<vmem>>, vector<1x32x64xf32>,
    %c6_44 = arith.constant 6 : index
    %c0_45 = arith.constant 0 : index
    %c0_46 = arith.constant 0 : index
    %69 = vector.load %arg1[%c6_44, %c0_45, %c0_46] : memref<8x16x64xf32, #tpu.memory_space<vmem>>, vector<1x16x64xf32>
    %70 = vector.shape_cast %69 : vector<1x16x64xf32> to vector<16x64xf32>
    %71 = arith.truncf %70 : vector<16x64xf32> to vector<16x64xbf16>
    %cst_47 = arith.constant dense<0.000000e+00> : vector<32x64xf32>
    %72 = tpu.matmul %1, %71, %cst_47 {dimension_numbers = #tpu.dot_dimension_numbers<[1], [0], [0], [1], [0, 0, 1, 1], [], []>} : vector<32x16xbf16>, vector<16x64xbf16>, vector<32x64xf32> -> vector<32x64xf32>
    %73 = vector.broadcast %2 : vector<32x1xf32> to vector<32x64xf32>
    %74 = arith.addf %72, %73 : vector<32x64xf32>
    %cst_48 = arith.constant 0.000000e+00 : f32
    %75 = vector.broadcast %cst_48 : f32 to vector<32x64xf32>
    %76 = arith.maximumf %74, %75 : vector<32x64xf32>
    %c7 = arith.constant 7 : index
    %c0_49 = arith.constant 0 : index
    %c0_50 = arith.constant 0 : index
    %77 = vector.load %arg7[%c7, %c0_49, %c0_50] : memref<10x32x64xf32, #tpu.memory_space<vmem>>, vector<1x32x64xf32>
    %78 = vector.shape_cast %77 : vector<1x32x64xf32> to vector<32x64xf32>
    %79 = vector.shape_cast %76 : vector<32x64xf32> to vector<1x32x64xf32>
    tpu.vector_store %arg7[%c7, %c0_49, %c0_50], %79 {strides = array<i32>} : memref<10x32x64xf32, #tpu.memory_space<vmem>>, vector<1x32x64xf32>,
    %c7_51 = arith.constant 7 : index
    %c0_52 = arith.constant 0 : index
    %c0_53 = arith.constant 0 : index
    %80 = vector.load %arg1[%c7_51, %c0_52, %c0_53] : memref<8x16x64xf32, #tpu.memory_space<vmem>>, vector<1x16x64xf32>
    %81 = vector.shape_cast %80 : vector<1x16x64xf32> to vector<16x64xf32>
    %82 = arith.truncf %81 : vector<16x64xf32> to vector<16x64xbf16>
    %cst_54 = arith.constant dense<0.000000e+00> : vector<32x64xf32>
    %83 = tpu.matmul %1, %82, %cst_54 {dimension_numbers = #tpu.dot_dimension_numbers<[1], [0], [0], [1], [0, 0, 1, 1], [], []>} : vector<32x16xbf16>, vector<16x64xbf16>, vector<32x64xf32> -> vector<32x64xf32>
    %84 = vector.broadcast %2 : vector<32x1xf32> to vector<32x64xf32>
    %85 = arith.addf %83, %84 : vector<32x64xf32>
    %cst_55 = arith.constant 0.000000e+00 : f32
    %86 = vector.broadcast %cst_55 : f32 to vector<32x64xf32>
    %87 = arith.maximumf %85, %86 : vector<32x64xf32>
    %c8 = arith.constant 8 : index
    %c0_56 = arith.constant 0 : index
    %c0_57 = arith.constant 0 : index
    %88 = vector.load %arg7[%c8, %c0_56, %c0_57] : memref<10x32x64xf32, #tpu.memory_space<vmem>>, vector<1x32x64xf32>
    %89 = vector.shape_cast %88 : vector<1x32x64xf32> to vector<32x64xf32>
    %90 = vector.shape_cast %87 : vector<32x64xf32> to vector<1x32x64xf32>
    tpu.vector_store %arg7[%c8, %c0_56, %c0_57], %90 {strides = array<i32>} : memref<10x32x64xf32, #tpu.memory_space<vmem>>, vector<1x32x64xf32>,
    %c8_58 = arith.constant 8 : index
    %c0_59 = arith.constant 0 : index
    %c0_60 = arith.constant 0 : index
    %91 = vector.load %arg7[%c8_58, %c0_59, %c0_60] : memref<10x32x64xf32, #tpu.memory_space<vmem>>, vector<1x32x64xf32>
    %92 = vector.shape_cast %91 : vector<1x32x64xf32> to vector<32x64xf32>
    %c0_61 = arith.constant 0 : index
    %c0_62 = arith.constant 0 : index
    %c0_63 = arith.constant 0 : index
    %93 = vector.load %arg7[%c0_61, %c0_62, %c0_63] : memref<10x32x64xf32, #tpu.memory_space<vmem>>, vector<1x32x64xf32>
    %94 = vector.shape_cast %93 : vector<1x32x64xf32> to vector<32x64xf32>
    %95 = vector.shape_cast %92 : vector<32x64xf32> to vector<1x32x64xf32>
    tpu.vector_store %arg7[%c0_61, %c0_62, %c0_63], %95 {strides = array<i32>} : memref<10x32x64xf32, #tpu.memory_space<vmem>>, vector<1x32x64xf32>,
    %c1_64 = arith.constant 1 : index
    %c0_65 = arith.constant 0 : index
    %c0_66 = arith.constant 0 : index
    %96 = vector.load %arg7[%c1_64, %c0_65, %c0_66] : memref<10x32x64xf32, #tpu.memory_space<vmem>>, vector<1x32x64xf32>
    %97 = vector.shape_cast %96 : vector<1x32x64xf32> to vector<32x64xf32>
    %c9 = arith.constant 9 : index
    %c0_67 = arith.constant 0 : index
    %c0_68 = arith.constant 0 : index
    %98 = vector.load %arg7[%c9, %c0_67, %c0_68] : memref<10x32x64xf32, #tpu.memory_space<vmem>>, vector<1x32x64xf32>
    %99 = vector.shape_cast %98 : vector<1x32x64xf32> to vector<32x64xf32>
    %100 = vector.shape_cast %97 : vector<32x64xf32> to vector<1x32x64xf32>
    tpu.vector_store %arg7[%c9, %c0_67, %c0_68], %100 {strides = array<i32>} : memref<10x32x64xf32, #tpu.memory_space<vmem>>, vector<1x32x64xf32>,
    %c0_69 = arith.constant 0 : index
    %c0_70 = arith.constant 0 : index
    %101 = vector.load %arg4[%c0_69, %c0_70] : memref<32x96xf32, #tpu.memory_space<vmem>>, vector<32x96xf32>
    %102 = arith.truncf %101 : vector<32x96xf32> to vector<32x96xbf16>
    %c0_71 = arith.constant 0 : index
    %c0_72 = arith.constant 0 : index
    %103 = vector.load %arg5[%c0_71, %c0_72] : memref<32x1xf32, #tpu.memory_space<vmem>>, vector<32x1xf32>
    %c0_73 = arith.constant 0 : index
    %c0_74 = arith.constant 0 : index
    %c0_75 = arith.constant 0 : index
    %104 = vector.load %arg7[%c0_73, %c0_74, %c0_75] : memref<10x32x64xf32, #tpu.memory_space<vmem>>, vector<1x32x64xf32>
    %105 = vector.shape_cast %104 : vector<1x32x64xf32> to vector<32x64xf32>
    %c1_76 = arith.constant 1 : index
    %c0_77 = arith.constant 0 : index
    %c0_78 = arith.constant 0 : index
    %106 = vector.load %arg7[%c1_76, %c0_77, %c0_78] : memref<10x32x64xf32, #tpu.memory_space<vmem>>, vector<1x32x64xf32>
    %107 = vector.shape_cast %106 : vector<1x32x64xf32> to vector<32x64xf32>
    %c2_79 = arith.constant 2 : index
    %c0_80 = arith.constant 0 : index
    %c0_81 = arith.constant 0 : index
    %108 = vector.load %arg7[%c2_79, %c0_80, %c0_81] : memref<10x32x64xf32, #tpu.memory_space<vmem>>, vector<1x32x64xf32>
    %109 = vector.shape_cast %108 : vector<1x32x64xf32> to vector<32x64xf32>
    %110 = tpu.concatenate %105, %107, %109 in 0 : vector<32x64xf32>, vector<32x64xf32>, vector<32x64xf32> -> vector<96x64xf32>
    %111 = arith.truncf %110 : vector<96x64xf32> to vector<96x64xbf16>
    %cst_82 = arith.constant dense<0.000000e+00> : vector<32x64xf32>
    %112 = tpu.matmul %102, %111, %cst_82 {dimension_numbers = #tpu.dot_dimension_numbers<[1], [0], [0], [1], [0, 0, 1, 1], [], []>} : vector<32x96xbf16>, vector<96x64xbf16>, vector<32x64xf32> -> vector<32x64xf32>
    %113 = vector.broadcast %103 : vector<32x1xf32> to vector<32x64xf32>
    %114 = arith.addf %112, %113 : vector<32x64xf32>
    %c0_83 = arith.constant 0 : index
    %c0_84 = arith.constant 0 : index
    %c0_85 = arith.constant 0 : index
    %115 = vector.load %arg6[%c0_83, %c0_84, %c0_85] : memref<8x32x64xf32, #tpu.memory_space<vmem>>, vector<1x32x64xf32>
    %116 = vector.shape_cast %115 : vector<1x32x64xf32> to vector<32x64xf32>
    %117 = vector.shape_cast %114 : vector<32x64xf32> to vector<1x32x64xf32>
    tpu.vector_store %arg6[%c0_83, %c0_84, %c0_85], %117 {strides = array<i32>} : memref<8x32x64xf32, #tpu.memory_space<vmem>>, vector<1x32x64xf32>,
    %c1_86 = arith.constant 1 : index
    %c0_87 = arith.constant 0 : index
    %c0_88 = arith.constant 0 : index
    %118 = vector.load %arg7[%c1_86, %c0_87, %c0_88] : memref<10x32x64xf32, #tpu.memory_space<vmem>>, vector<1x32x64xf32>
    %119 = vector.shape_cast %118 : vector<1x32x64xf32> to vector<32x64xf32>
    %c2_89 = arith.constant 2 : index
    %c0_90 = arith.constant 0 : index
    %c0_91 = arith.constant 0 : index
    %120 = vector.load %arg7[%c2_89, %c0_90, %c0_91] : memref<10x32x64xf32, #tpu.memory_space<vmem>>, vector<1x32x64xf32>
    %121 = vector.shape_cast %120 : vector<1x32x64xf32> to vector<32x64xf32>
    %c3_92 = arith.constant 3 : index
    %c0_93 = arith.constant 0 : index
    %c0_94 = arith.constant 0 : index
    %122 = vector.load %arg7[%c3_92, %c0_93, %c0_94] : memref<10x32x64xf32, #tpu.memory_space<vmem>>, vector<1x32x64xf32>
    %123 = vector.shape_cast %122 : vector<1x32x64xf32> to vector<32x64xf32>
    %124 = tpu.concatenate %119, %121, %123 in 0 : vector<32x64xf32>, vector<32x64xf32>, vector<32x64xf32> -> vector<96x64xf32>
    %125 = arith.truncf %124 : vector<96x64xf32> to vector<96x64xbf16>
    %cst_95 = arith.constant dense<0.000000e+00> : vector<32x64xf32>
    %126 = tpu.matmul %102, %125, %cst_95 {dimension_numbers = #tpu.dot_dimension_numbers<[1], [0], [0], [1], [0, 0, 1, 1], [], []>} : vector<32x96xbf16>, vector<96x64xbf16>, vector<32x64xf32> -> vector<32x64xf32>
    %127 = vector.broadcast %103 : vector<32x1xf32> to vector<32x64xf32>
    %128 = arith.addf %126, %127 : vector<32x64xf32>
    %c1_96 = arith.constant 1 : index
    %c0_97 = arith.constant 0 : index
    %c0_98 = arith.constant 0 : index
    %129 = vector.load %arg6[%c1_96, %c0_97, %c0_98] : memref<8x32x64xf32, #tpu.memory_space<vmem>>, vector<1x32x64xf32>
    %130 = vector.shape_cast %129 : vector<1x32x64xf32> to vector<32x64xf32>
    %131 = vector.shape_cast %128 : vector<32x64xf32> to vector<1x32x64xf32>
    tpu.vector_store %arg6[%c1_96, %c0_97, %c0_98], %131 {strides = array<i32>} : memref<8x32x64xf32, #tpu.memory_space<vmem>>, vector<1x32x64xf32>,
    %c2_99 = arith.constant 2 : index
    %c0_100 = arith.constant 0 : index
    %c0_101 = arith.constant 0 : index
    %132 = vector.load %arg7[%c2_99, %c0_100, %c0_101] : memref<10x32x64xf32, #tpu.memory_space<vmem>>, vector<1x32x64xf32>
    %133 = vector.shape_cast %132 : vector<1x32x64xf32> to vector<32x64xf32>
    %c3_102 = arith.constant 3 : index
    %c0_103 = arith.constant 0 : index
    %c0_104 = arith.constant 0 : index
    %134 = vector.load %arg7[%c3_102, %c0_103, %c0_104] : memref<10x32x64xf32, #tpu.memory_space<vmem>>, vector<1x32x64xf32>
    %135 = vector.shape_cast %134 : vector<1x32x64xf32> to vector<32x64xf32>
    %c4_105 = arith.constant 4 : index
    %c0_106 = arith.constant 0 : index
    %c0_107 = arith.constant 0 : index
    %136 = vector.load %arg7[%c4_105, %c0_106, %c0_107] : memref<10x32x64xf32, #tpu.memory_space<vmem>>, vector<1x32x64xf32>
    %137 = vector.shape_cast %136 : vector<1x32x64xf32> to vector<32x64xf32>
    %138 = tpu.concatenate %133, %135, %137 in 0 : vector<32x64xf32>, vector<32x64xf32>, vector<32x64xf32> -> vector<96x64xf32>
    %139 = arith.truncf %138 : vector<96x64xf32> to vector<96x64xbf16>
    %cst_108 = arith.constant dense<0.000000e+00> : vector<32x64xf32>
    %140 = tpu.matmul %102, %139, %cst_108 {dimension_numbers = #tpu.dot_dimension_numbers<[1], [0], [0], [1], [0, 0, 1, 1], [], []>} : vector<32x96xbf16>, vector<96x64xbf16>, vector<32x64xf32> -> vector<32x64xf32>
    %141 = vector.broadcast %103 : vector<32x1xf32> to vector<32x64xf32>
    %142 = arith.addf %140, %141 : vector<32x64xf32>
    %c2_109 = arith.constant 2 : index
    %c0_110 = arith.constant 0 : index
    %c0_111 = arith.constant 0 : index
    %143 = vector.load %arg6[%c2_109, %c0_110, %c0_111] : memref<8x32x64xf32, #tpu.memory_space<vmem>>, vector<1x32x64xf32>
    %144 = vector.shape_cast %143 : vector<1x32x64xf32> to vector<32x64xf32>
    %145 = vector.shape_cast %142 : vector<32x64xf32> to vector<1x32x64xf32>
    tpu.vector_store %arg6[%c2_109, %c0_110, %c0_111], %145 {strides = array<i32>} : memref<8x32x64xf32, #tpu.memory_space<vmem>>, vector<1x32x64xf32>,
    %c3_112 = arith.constant 3 : index
    %c0_113 = arith.constant 0 : index
    %c0_114 = arith.constant 0 : index
    %146 = vector.load %arg7[%c3_112, %c0_113, %c0_114] : memref<10x32x64xf32, #tpu.memory_space<vmem>>, vector<1x32x64xf32>
    %147 = vector.shape_cast %146 : vector<1x32x64xf32> to vector<32x64xf32>
    %c4_115 = arith.constant 4 : index
    %c0_116 = arith.constant 0 : index
    %c0_117 = arith.constant 0 : index
    %148 = vector.load %arg7[%c4_115, %c0_116, %c0_117] : memref<10x32x64xf32, #tpu.memory_space<vmem>>, vector<1x32x64xf32>
    %149 = vector.shape_cast %148 : vector<1x32x64xf32> to vector<32x64xf32>
    %c5_118 = arith.constant 5 : index
    %c0_119 = arith.constant 0 : index
    %c0_120 = arith.constant 0 : index
    %150 = vector.load %arg7[%c5_118, %c0_119, %c0_120] : memref<10x32x64xf32, #tpu.memory_space<vmem>>, vector<1x32x64xf32>
    %151 = vector.shape_cast %150 : vector<1x32x64xf32> to vector<32x64xf32>
    %152 = tpu.concatenate %147, %149, %151 in 0 : vector<32x64xf32>, vector<32x64xf32>, vector<32x64xf32> -> vector<96x64xf32>
    %153 = arith.truncf %152 : vector<96x64xf32> to vector<96x64xbf16>
    %cst_121 = arith.constant dense<0.000000e+00> : vector<32x64xf32>
    %154 = tpu.matmul %102, %153, %cst_121 {dimension_numbers = #tpu.dot_dimension_numbers<[1], [0], [0], [1], [0, 0, 1, 1], [], []>} : vector<32x96xbf16>, vector<96x64xbf16>, vector<32x64xf32> -> vector<32x64xf32>
    %155 = vector.broadcast %103 : vector<32x1xf32> to vector<32x64xf32>
    %156 = arith.addf %154, %155 : vector<32x64xf32>
    %c3_122 = arith.constant 3 : index
    %c0_123 = arith.constant 0 : index
    %c0_124 = arith.constant 0 : index
    %157 = vector.load %arg6[%c3_122, %c0_123, %c0_124] : memref<8x32x64xf32, #tpu.memory_space<vmem>>, vector<1x32x64xf32>
    %158 = vector.shape_cast %157 : vector<1x32x64xf32> to vector<32x64xf32>
    %159 = vector.shape_cast %156 : vector<32x64xf32> to vector<1x32x64xf32>
    tpu.vector_store %arg6[%c3_122, %c0_123, %c0_124], %159 {strides = array<i32>} : memref<8x32x64xf32, #tpu.memory_space<vmem>>, vector<1x32x64xf32>,
    %c4_125 = arith.constant 4 : index
    %c0_126 = arith.constant 0 : index
    %c0_127 = arith.constant 0 : index
    %160 = vector.load %arg7[%c4_125, %c0_126, %c0_127] : memref<10x32x64xf32, #tpu.memory_space<vmem>>, vector<1x32x64xf32>
    %161 = vector.shape_cast %160 : vector<1x32x64xf32> to vector<32x64xf32>
    %c5_128 = arith.constant 5 : index
    %c0_129 = arith.constant 0 : index
    %c0_130 = arith.constant 0 : index
    %162 = vector.load %arg7[%c5_128, %c0_129, %c0_130] : memref<10x32x64xf32, #tpu.memory_space<vmem>>, vector<1x32x64xf32>
    %163 = vector.shape_cast %162 : vector<1x32x64xf32> to vector<32x64xf32>
    %c6_131 = arith.constant 6 : index
    %c0_132 = arith.constant 0 : index
    %c0_133 = arith.constant 0 : index
    %164 = vector.load %arg7[%c6_131, %c0_132, %c0_133] : memref<10x32x64xf32, #tpu.memory_space<vmem>>, vector<1x32x64xf32>
    %165 = vector.shape_cast %164 : vector<1x32x64xf32> to vector<32x64xf32>
    %166 = tpu.concatenate %161, %163, %165 in 0 : vector<32x64xf32>, vector<32x64xf32>, vector<32x64xf32> -> vector<96x64xf32>
    %167 = arith.truncf %166 : vector<96x64xf32> to vector<96x64xbf16>
    %cst_134 = arith.constant dense<0.000000e+00> : vector<32x64xf32>
    %168 = tpu.matmul %102, %167, %cst_134 {dimension_numbers = #tpu.dot_dimension_numbers<[1], [0], [0], [1], [0, 0, 1, 1], [], []>} : vector<32x96xbf16>, vector<96x64xbf16>, vector<32x64xf32> -> vector<32x64xf32>
    %169 = vector.broadcast %103 : vector<32x1xf32> to vector<32x64xf32>
    %170 = arith.addf %168, %169 : vector<32x64xf32>
    %c4_135 = arith.constant 4 : index
    %c0_136 = arith.constant 0 : index
    %c0_137 = arith.constant 0 : index
    %171 = vector.load %arg6[%c4_135, %c0_136, %c0_137] : memref<8x32x64xf32, #tpu.memory_space<vmem>>, vector<1x32x64xf32>
    %172 = vector.shape_cast %171 : vector<1x32x64xf32> to vector<32x64xf32>
    %173 = vector.shape_cast %170 : vector<32x64xf32> to vector<1x32x64xf32>
    tpu.vector_store %arg6[%c4_135, %c0_136, %c0_137], %173 {strides = array<i32>} : memref<8x32x64xf32, #tpu.memory_space<vmem>>, vector<1x32x64xf32>,
    %c5_138 = arith.constant 5 : index
    %c0_139 = arith.constant 0 : index
    %c0_140 = arith.constant 0 : index
    %174 = vector.load %arg7[%c5_138, %c0_139, %c0_140] : memref<10x32x64xf32, #tpu.memory_space<vmem>>, vector<1x32x64xf32>
    %175 = vector.shape_cast %174 : vector<1x32x64xf32> to vector<32x64xf32>
    %c6_141 = arith.constant 6 : index
    %c0_142 = arith.constant 0 : index
    %c0_143 = arith.constant 0 : index
    %176 = vector.load %arg7[%c6_141, %c0_142, %c0_143] : memref<10x32x64xf32, #tpu.memory_space<vmem>>, vector<1x32x64xf32>
    %177 = vector.shape_cast %176 : vector<1x32x64xf32> to vector<32x64xf32>
    %c7_144 = arith.constant 7 : index
    %c0_145 = arith.constant 0 : index
    %c0_146 = arith.constant 0 : index
    %178 = vector.load %arg7[%c7_144, %c0_145, %c0_146] : memref<10x32x64xf32, #tpu.memory_space<vmem>>, vector<1x32x64xf32>
    %179 = vector.shape_cast %178 : vector<1x32x64xf32> to vector<32x64xf32>
    %180 = tpu.concatenate %175, %177, %179 in 0 : vector<32x64xf32>, vector<32x64xf32>, vector<32x64xf32> -> vector<96x64xf32>
    %181 = arith.truncf %180 : vector<96x64xf32> to vector<96x64xbf16>
    %cst_147 = arith.constant dense<0.000000e+00> : vector<32x64xf32>
    %182 = tpu.matmul %102, %181, %cst_147 {dimension_numbers = #tpu.dot_dimension_numbers<[1], [0], [0], [1], [0, 0, 1, 1], [], []>} : vector<32x96xbf16>, vector<96x64xbf16>, vector<32x64xf32> -> vector<32x64xf32>
    %183 = vector.broadcast %103 : vector<32x1xf32> to vector<32x64xf32>
    %184 = arith.addf %182, %183 : vector<32x64xf32>
    %c5_148 = arith.constant 5 : index
    %c0_149 = arith.constant 0 : index
    %c0_150 = arith.constant 0 : index
    %185 = vector.load %arg6[%c5_148, %c0_149, %c0_150] : memref<8x32x64xf32, #tpu.memory_space<vmem>>, vector<1x32x64xf32>
    %186 = vector.shape_cast %185 : vector<1x32x64xf32> to vector<32x64xf32>
    %187 = vector.shape_cast %184 : vector<32x64xf32> to vector<1x32x64xf32>
    tpu.vector_store %arg6[%c5_148, %c0_149, %c0_150], %187 {strides = array<i32>} : memref<8x32x64xf32, #tpu.memory_space<vmem>>, vector<1x32x64xf32>,
    %c6_151 = arith.constant 6 : index
    %c0_152 = arith.constant 0 : index
    %c0_153 = arith.constant 0 : index
    %188 = vector.load %arg7[%c6_151, %c0_152, %c0_153] : memref<10x32x64xf32, #tpu.memory_space<vmem>>, vector<1x32x64xf32>
    %189 = vector.shape_cast %188 : vector<1x32x64xf32> to vector<32x64xf32>
    %c7_154 = arith.constant 7 : index
    %c0_155 = arith.constant 0 : index
    %c0_156 = arith.constant 0 : index
    %190 = vector.load %arg7[%c7_154, %c0_155, %c0_156] : memref<10x32x64xf32, #tpu.memory_space<vmem>>, vector<1x32x64xf32>
    %191 = vector.shape_cast %190 : vector<1x32x64xf32> to vector<32x64xf32>
    %c8_157 = arith.constant 8 : index
    %c0_158 = arith.constant 0 : index
    %c0_159 = arith.constant 0 : index
    %192 = vector.load %arg7[%c8_157, %c0_158, %c0_159] : memref<10x32x64xf32, #tpu.memory_space<vmem>>, vector<1x32x64xf32>
    %193 = vector.shape_cast %192 : vector<1x32x64xf32> to vector<32x64xf32>
    %194 = tpu.concatenate %189, %191, %193 in 0 : vector<32x64xf32>, vector<32x64xf32>, vector<32x64xf32> -> vector<96x64xf32>
    %195 = arith.truncf %194 : vector<96x64xf32> to vector<96x64xbf16>
    %cst_160 = arith.constant dense<0.000000e+00> : vector<32x64xf32>
    %196 = tpu.matmul %102, %195, %cst_160 {dimension_numbers = #tpu.dot_dimension_numbers<[1], [0], [0], [1], [0, 0, 1, 1], [], []>} : vector<32x96xbf16>, vector<96x64xbf16>, vector<32x64xf32> -> vector<32x64xf32>
    %197 = vector.broadcast %103 : vector<32x1xf32> to vector<32x64xf32>
    %198 = arith.addf %196, %197 : vector<32x64xf32>
    %c6_161 = arith.constant 6 : index
    %c0_162 = arith.constant 0 : index
    %c0_163 = arith.constant 0 : index
    %199 = vector.load %arg6[%c6_161, %c0_162, %c0_163] : memref<8x32x64xf32, #tpu.memory_space<vmem>>, vector<1x32x64xf32>
    %200 = vector.shape_cast %199 : vector<1x32x64xf32> to vector<32x64xf32>
    %201 = vector.shape_cast %198 : vector<32x64xf32> to vector<1x32x64xf32>
    tpu.vector_store %arg6[%c6_161, %c0_162, %c0_163], %201 {strides = array<i32>} : memref<8x32x64xf32, #tpu.memory_space<vmem>>, vector<1x32x64xf32>,
    %c7_164 = arith.constant 7 : index
    %c0_165 = arith.constant 0 : index
    %c0_166 = arith.constant 0 : index
    %202 = vector.load %arg7[%c7_164, %c0_165, %c0_166] : memref<10x32x64xf32, #tpu.memory_space<vmem>>, vector<1x32x64xf32>
    %203 = vector.shape_cast %202 : vector<1x32x64xf32> to vector<32x64xf32>
    %c8_167 = arith.constant 8 : index
    %c0_168 = arith.constant 0 : index
    %c0_169 = arith.constant 0 : index
    %204 = vector.load %arg7[%c8_167, %c0_168, %c0_169] : memref<10x32x64xf32, #tpu.memory_space<vmem>>, vector<1x32x64xf32>
    %205 = vector.shape_cast %204 : vector<1x32x64xf32> to vector<32x64xf32>
    %c9_170 = arith.constant 9 : index
    %c0_171 = arith.constant 0 : index
    %c0_172 = arith.constant 0 : index
    %206 = vector.load %arg7[%c9_170, %c0_171, %c0_172] : memref<10x32x64xf32, #tpu.memory_space<vmem>>, vector<1x32x64xf32>
    %207 = vector.shape_cast %206 : vector<1x32x64xf32> to vector<32x64xf32>
    %208 = tpu.concatenate %203, %205, %207 in 0 : vector<32x64xf32>, vector<32x64xf32>, vector<32x64xf32> -> vector<96x64xf32>
    %209 = arith.truncf %208 : vector<96x64xf32> to vector<96x64xbf16>
    %cst_173 = arith.constant dense<0.000000e+00> : vector<32x64xf32>
    %210 = tpu.matmul %102, %209, %cst_173 {dimension_numbers = #tpu.dot_dimension_numbers<[1], [0], [0], [1], [0, 0, 1, 1], [], []>} : vector<32x96xbf16>, vector<96x64xbf16>, vector<32x64xf32> -> vector<32x64xf32>
    %211 = vector.broadcast %103 : vector<32x1xf32> to vector<32x64xf32>
    %212 = arith.addf %210, %211 : vector<32x64xf32>
    %c7_174 = arith.constant 7 : index
    %c0_175 = arith.constant 0 : index
    %c0_176 = arith.constant 0 : index
    %213 = vector.load %arg6[%c7_174, %c0_175, %c0_176] : memref<8x32x64xf32, #tpu.memory_space<vmem>>, vector<1x32x64xf32>
    %214 = vector.shape_cast %213 : vector<1x32x64xf32> to vector<32x64xf32>
    %215 = vector.shape_cast %212 : vector<32x64xf32> to vector<1x32x64xf32>
    tpu.vector_store %arg6[%c7_174, %c0_175, %c0_176], %215 {strides = array<i32>} : memref<8x32x64xf32, #tpu.memory_space<vmem>>, vector<1x32x64xf32>,
    return
  }
  func.func @transform_0(%arg0: i32) -> (i32, i32, i32) {
    %c0_i32 = arith.constant 0 : i32
    %c0_i32_0 = arith.constant 0 : i32
    %c0_i32_1 = arith.constant 0 : i32
    return %c0_i32, %c0_i32_0, %arg0 : i32, i32, i32
  }
  func.func @transform_1(%arg0: i32) -> (i32, i32) {
    %c0_i32 = arith.constant 0 : i32
    %c0_i32_0 = arith.constant 0 : i32
    %c0_i32_1 = arith.constant 0 : i32
    return %c0_i32, %c0_i32_0 : i32, i32
  }
  func.func @transform_2(%arg0: i32) -> (i32, i32) {
    %c0_i32 = arith.constant 0 : i32
    %c0_i32_0 = arith.constant 0 : i32
    %c0_i32_1 = arith.constant 0 : i32
    return %c0_i32, %c0_i32_0 : i32, i32
  }
  func.func @transform_3(%arg0: i32) -> (i32, i32) {
    %c0_i32 = arith.constant 0 : i32
    %c0_i32_0 = arith.constant 0 : i32
    %c0_i32_1 = arith.constant 0 : i32
    return %c0_i32, %c0_i32_0 : i32, i32
  }
  func.func @transform_4(%arg0: i32) -> (i32, i32) {
    %c0_i32 = arith.constant 0 : i32
    %c0_i32_0 = arith.constant 0 : i32
    %c0_i32_1 = arith.constant 0 : i32
    return %c0_i32, %c0_i32_0 : i32, i32
  }
  func.func @transform_5(%arg0: i32) -> (i32, i32, i32) {
    %c0_i32 = arith.constant 0 : i32
    %c0_i32_0 = arith.constant 0 : i32
    %c0_i32_1 = arith.constant 0 : i32
    return %c0_i32, %c0_i32_0, %arg0 : i32, i32, i32
  }
}

</mosaic_0001>

<bundles_post_ra>
// kernel: tpu_custom_call.1
= control target key start
LH: loop header
LB: loop body
LE: loop exit
PB: predicated region body
PF: predicated region fallthrough
CT: control target
= control target key end

     0   :  { %10 = vsyncpa [#allocation4], 0  ;;  %s2011_s0 = inlined_call_operand.hbm [shape: f32[8,16,64], index: 0, kind: input, shape index: {}]   ;;  %s2012_s1 = inlined_call_operand.vmem [shape: f32[32,16], index: 1, kind: input, shape index: {}]   ;;  %s2013_s2 = inlined_call_operand.vmem [shape: f32[32,1], index: 2, kind: input, shape index: {}]   ;;  %s2014_s3 = inlined_call_operand.vmem [shape: f32[32,96], index: 3, kind: input, shape index: {}]   ;;  %s2015_s4 = inlined_call_operand.vmem [shape: f32[32,1], index: 4, kind: input, shape index: {}]   ;;  %s2016_s5 = inlined_call_operand.hbm [shape: f32[8,32,64], index: 5, kind: output, shape index: {}]  }
   0x1   :  { %11 = vsyncpa [#allocation5], 0  ;;  %s1566_s18 = smov [#allocation3]   ;;  %s1518_s22 = scalar_lea.hbm %s2011_s0, 2048 }
   0x2   :  { %s17_s19 = sshll.u32 %s1566_s18, 4  ;;  %p1519_p0 = scmp.ne.s32.totalorder %s2011_s0, %s1518_s22  ;;  %s18_s19 = int_to_ptr.vmem [resolvable:$true] %s17_s19 }
   0x3   :  { %p1522_p1 = scmp.lt.u32.totalorder %s1518_s22, %s2011_s0 }
   0x5   :  { %p1524_p2 = pnand %p1522_p1, %p1519_p0 }
   0x7   :  { %1527 = shalt.err (!%p1524_p2)
}
   0x8   :  { %s1528_s27 = scalar_lea.vmem %s18_s19, 2048  ;;  %p1533_p4 = scmp.lt.s32.totalorder %s18_s19, %s18_s19 }
   0x9   :  { %p1529_p3 = scmp.ne.s32.totalorder %s18_s19, %s1528_s27  ;;  %p1534_p5 = scmp.lt.s32.totalorder %s1528_s27, %s1528_s27 }
   0xb   :  { %p1535_p6 = por %p1534_p5, %p1533_p4 }
   0xd   :  { %p1536_p7 = pnand %p1535_p6, %p1529_p3 }
   0xf   :  { %1539 = shalt.err (!%p1536_p7)
}
  0x10   :  { %s1567_s28 = smov 128   ;;  %s1568_s29 = smov 8  }
  0x11   :  { %23 = dma.hbm_to_vmem [thread:$0]  %s2011_s0, 2048, %s18_s19, [#allocation4], %s1567_s28, %s1567_s28, %s1568_s29  }
  0x12   :  { %1562 = dma.done.wait [#allocation4], 2048  }
  0x13   :  { %1563 = vsyncadd [#allocation4], 4294965248  ;;  %v1569_v0 = vmov 0   ;;  %v46_v1 = vld [vmem:[#allocation3] sm:$0xff]  ;;  %v47_v2 = vld [vmem:[#allocation3 + $0x8] sm:$0xff]  ;;  %vm69_vm0 = vcmask 130048  }
  0x14   :  { %1517 = vset.pattern.permute.xlu1 %v1569_v0  ;;  %1516 = vset.pattern.permute.xlu0 %v1569_v0  ;;  %v136_v3 = vld [vmem:[#allocation3 + $0x10] sm:$0xff]  ;;  %v48_v4 = vpack.c.bf16 %v47_v2, %v46_v1  ;;  %v137_v5 = vld [vmem:[#allocation3 + $0x18] sm:$0xff]  ;;  %v36_v6 = vld [vmem:[%s2012_s1] sm:$0xff]  ;;  %vm634_vm1 = vcmask 785408   ;;  %vm130_vm2 = vcmask 523264  }
  0x15   :  { %v37_v7 = vld [vmem:[%s2012_s1 + $0x8] sm:$0xff]  ;;  %v138_v8 = vpack.c.bf16 %v137_v5, %v136_v3  ;;  %v38_v10 = vld [vmem:[%s2012_s1 + $0x10] sm:$0xff]  ;;  %v39_v11 = vld [vmem:[%s2012_s1 + $0x18] sm:$0xff] }
  0x16   :  { %v1622_v9 = vpack.c.bf16 %v37_v7, %v36_v6  ;;  %v260_v12 = vld [vmem:[#allocation3 + $0x30] sm:$0xff]  ;;  %1335 = vmatprep.subr.bf16.mxu0 %v48_v4  ;;  %v1630_v13 = vpack.c.bf16 %v39_v11, %v38_v10  ;;  %v261_v14 = vld [vmem:[#allocation3 + $0x38] sm:$0xff]  ;;  %v198_v15 = vld [vmem:[#allocation3 + $0x20] sm:$0xff] }
  0x17   :  { %v199_v16 = vld [vmem:[#allocation3 + $0x28] sm:$0xff]  ;;  %1341 = vmatprep.subr.bf16.mxu1 %v138_v8  ;;  %1336 = vmatpush3.bf16.msra.mxu0 %v48_v4  ;;  %v262_v17 = vpack.c.bf16 %v261_v14, %v260_v12  ;;  %v384_v19 = vld [vmem:[#allocation3 + $0x50] sm:$0xff]  ;;  %v385_v20 = vld [vmem:[#allocation3 + $0x58] sm:$0xff] }
  0x18   :  { %v200_v18 = vpack.c.bf16 %v199_v16, %v198_v15  ;;  %v322_v21 = vld [vmem:[#allocation3 + $0x40] sm:$0xff]  ;;  %1342 = vmatpush3.bf16.msra.mxu1 %v138_v8  ;;  %1337 = vmatprep.mubr.msk.bf16.mxu0 %vm69_vm0, %v1622_v9  ;;  %v323_v22 = vld [vmem:[#allocation3 + $0x48] sm:$0xff]  ;;  %v386_v23 = vpack.c.bf16 %v385_v20, %v384_v19  ;;  %v44_v25 = vld [vmem:[%s2013_s2 + $0x10] sm:$0xff] }
  0x19   :  { %1343 = vmatprep.mubr.msk.bf16.mxu1 %vm69_vm0, %v1622_v9  ;;  %1353 = vmatprep.subr.bf16.mxu1 %v262_v17  ;;  %v324_v24 = vpack.c.bf16 %v323_v22, %v322_v21  ;;  %v42_v26 = vld [vmem:[%s2013_s2] sm:$0xff]  ;;  %v508_v27 = vld [vmem:[#allocation3 + $0x70] sm:$0xff]  ;;  %v509_v28 = vld [vmem:[#allocation3 + $0x78] sm:$0xff] }
  0x1a   :  { %1338 = vmatmul.mubr.msk.bf16.vlgmr.msra.gmra.mrb[0].mxu0 %vm69_vm0, %v1630_v13  ;;  %1347 = vmatprep.subr.bf16.mxu0 %v200_v18  ;;  %v446_v29 = vld [vmem:[#allocation3 + $0x60] sm:$0xff]  ;;  %v447_v30 = vld [vmem:[#allocation3 + $0x68] sm:$0xff]  ;;  %v45_v31 = vld [vmem:[%s2013_s2 + $0x18] sm:$0xff]  ;;  %v510_v32 = vpack.c.bf16 %v509_v28, %v508_v27 }
  0x1b   :  { %1344 = vmatmul.mubr.msk.bf16.vlgmr.msra.gmra.mrb[0].mxu1 %vm69_vm0, %v1630_v13  ;;  %1348 = vmatpush3.bf16.msra.mxu0 %v200_v18  ;;  %v448_v33 = vpack.c.bf16 %v447_v30, %v446_v29  ;;  %v43_v34 = vld [vmem:[%s2013_s2 + $0x8] sm:$0xff]  ;;  %v592_v36 = vld [vmem:[%s2015_s4] sm:$0xff]  ;;  %v595_v37 = vld [vmem:[%s2015_s4 + $0x18] sm:$0xff] }
  0x1c   :  { %1354 = vmatpush3.bf16.msra.mxu1 %v262_v17  ;;  %1349 = vmatprep.mubr.msk.bf16.mxu0 %vm69_vm0, %v1622_v9  ;;  %v593_v35 = vld [vmem:[%s2015_s4 + $0x8] sm:$0xff]  ;;  %v594_v38 = vld [vmem:[%s2015_s4 + $0x10] sm:$0xff]  ;;  %v586_v39 = vld [vmem:[%s2014_s3] sm:$0xff] }
  0x1d   :  { %1355 = vmatprep.mubr.msk.bf16.mxu1 %vm69_vm0, %v1622_v9  ;;  %1365 = vmatprep.subr.bf16.mxu1 %v386_v23  ;;  %v587_v40 = vld [vmem:[%s2014_s3 + $0x8] sm:$0xff] }
  0x1e   :  { %1359 = vmatprep.subr.bf16.mxu0 %v324_v24  ;;  %61 = vperm.xlu1 %1517, %v44_v25   ;;  %v1694_v41 = vpack.c.bf16 %v587_v40, %v586_v39 }
  0x1f   :  { %51 = vperm.xlu0 %1516, %v42_v26  }
  0x22   :  { %1350 = vmatmul.mubr.msk.bf16.vlgmr.msra.gmra.mrb[4].mxu0 %vm69_vm0, %v1630_v13  ;;  %66 = vperm.xlu1 %1517, %v45_v31  }
  0x23   :  { %1356 = vmatmul.mubr.msk.bf16.vlgmr.msra.gmra.mrb[4].mxu1 %vm69_vm0, %v1630_v13  ;;  %1360 = vmatpush3.bf16.msra.mxu0 %v324_v24 }
  0x24   :  { %1366 = vmatpush3.bf16.msra.mxu1 %v386_v23  ;;  %1361 = vmatprep.mubr.msk.bf16.mxu0 %vm69_vm0, %v1622_v9 }
  0x25   :  { %1367 = vmatprep.mubr.msk.bf16.mxu1 %vm69_vm0, %v1622_v9  ;;  %1377 = vmatprep.subr.bf16.mxu1 %v510_v32 }
  0x26   :  { %1371 = vmatprep.subr.bf16.mxu0 %v448_v33  ;;  %56 = vperm.xlu0 %1516, %v43_v34  }
  0x27   :  { %621 = vperm.xlu1 %1517, %v593_v35  }
  0x2a   :  { %1362 = vmatmul.mubr.msk.bf16.vlgmr.msra.gmra.mrb[8].mxu0 %vm69_vm0, %v1630_v13  ;;  %616 = vperm.xlu0 %1516, %v592_v36  }
  0x2b   :  { %1368 = vmatmul.mubr.msk.bf16.vlgmr.msra.gmra.mrb[8].mxu1 %vm69_vm0, %v1630_v13  ;;  %1372 = vmatpush3.bf16.msra.mxu0 %v448_v33 }
  0x2c   :  { %1378 = vmatpush3.bf16.msra.mxu1 %v510_v32  ;;  %1373 = vmatprep.mubr.msk.bf16.mxu0 %vm69_vm0, %v1622_v9 }
  0x2d   :  { %1379 = vmatprep.mubr.msk.bf16.mxu1 %vm69_vm0, %v1622_v9  ;;  %631 = vperm.xlu1 %1517, %v595_v37  }
  0x2e   :  { %626 = vperm.xlu0 %1516, %v594_v38  }
  0x32   :  { %1374 = vmatmul.mubr.msk.bf16.vlgmr.msra.gmra.mrb[12].mxu0 %vm69_vm0, %v1630_v13 }
  0x33   :  { %1380 = vmatmul.mubr.msk.bf16.vlgmr.msra.gmra.mrb[12].mxu1 %vm69_vm0, %v1630_v13  ;;  %1395 = vmatprep.mubr.msk.bf16.mxu0 %vm634_vm1, %v1694_v41 }
  0x34   :  { %1411 = vmatprep.mubr.msk.bf16.mxu1 %vm634_vm1, %v1694_v41 }
  0x9d   :  { %v1700_v42 = vpop.permute.xlu1 %61 }
  0x9e   :  { %v1702_v43 = vpop.permute.xlu0 %51 }
  0xa1   :  { %v1704_v44 = vpop.permute.xlu1 %66 }
  0xa5   :  { %v1706_v46 = vpop.permute.xlu0 %56 }
  0xed   :  { %v1339_v45 = vpop.f32.mrb[0].mxu0 }
  0xee   :  { %v119_v47 = vadd.f32 %v1339_v45, %v1700_v42  ;;  %v1345_v48 = vpop.f32.mrb[0].mxu1  ;;  %v110_v49 = vpop.f32.mrb[1].mxu0 }
  0xef   :  { %v182_v50 = vadd.f32 %v1345_v48, %v1700_v42  ;;  %v111_v51 = vadd.f32 %v110_v49, %v1702_v43  ;;  %v173_v52 = vpop.f32.mrb[1].mxu1  ;;  %v1340_v53 = vpop.f32.mrb[2].mxu0 }
  0xf0   :  { %v127_v54 = vmax.f32 %v119_v47, 0.0  ;;  %v174_v55 = vadd.f32 %v173_v52, %v1702_v43  ;;  %v122_v56 = vadd.f32 %v1340_v53, %v1704_v44  ;;  %v1346_v57 = vpop.f32.mrb[2].mxu1  ;;  %v113_v58 = vpop.f32.mrb[3].mxu0 }
  0xf1   :  { %v190_v59 = vmax.f32 %v182_v50, 0.0  ;;  %v125_v60 = vmax.f32 %v111_v51, 0.0  ;;  %v185_v61 = vadd.f32 %v1346_v57, %v1704_v44  ;;  %v114_v62 = vadd.f32 %v113_v58, %v1706_v46  ;;  %v176_v63 = vpop.f32.mrb[3].mxu1 }
  0xf2   :  { %133 = vst.msk [vmem:[#allocation2 + $0x30] sm:$0xff] %vm130_vm2, %v127_v54  ;;  %v188_v0 = vmax.f32 %v174_v55, 0.0  ;;  %v128_v1 = vmax.f32 %v122_v56, 0.0  ;;  %v177_v2 = vadd.f32 %v176_v63, %v1706_v46 }
  0xf3   :  { %195 = vst.msk [vmem:[#allocation2 + $0x50] sm:$0xff] %vm130_vm2, %v190_v59  ;;  %131 = vst.msk [vmem:[#allocation2 + $0x20] sm:$0xff] %vm130_vm2, %v125_v60  ;;  %v191_v3 = vmax.f32 %v185_v61, 0.0  ;;  %v126_v4 = vmax.f32 %v114_v62, 0.0 }
  0xf4   :  { %193 = vst.msk [vmem:[#allocation2 + $0x40] sm:$0xff] %vm130_vm2, %v188_v0  ;;  %134 = vst.msk [vmem:[#allocation2 + $0x38] sm:$0xff] %vm130_vm2, %v128_v1  ;;  %v189_v5 = vmax.f32 %v177_v2, 0.0 }
  0xf5   :  { %196 = vst.msk [vmem:[#allocation2 + $0x58] sm:$0xff] %vm130_vm2, %v191_v3  ;;  %132 = vst.msk [vmem:[#allocation2 + $0x28] sm:$0xff] %vm130_vm2, %v126_v4  ;;  %v1351_v6 = vpop.f32.mrb[4].mxu0 }
  0xf6   :  { %194 = vst.msk [vmem:[#allocation2 + $0x48] sm:$0xff] %vm130_vm2, %v189_v5  ;;  %v1357_v7 = vpop.f32.mrb[4].mxu1  ;;  %v244_v8 = vadd.f32 %v1351_v6, %v1700_v42  ;;  %v235_v9 = vpop.f32.mrb[5].mxu0 }
  0xf7   :  { %v306_v10 = vadd.f32 %v1357_v7, %v1700_v42  ;;  %v297_v11 = vpop.f32.mrb[5].mxu1  ;;  %v236_v12 = vadd.f32 %v235_v9, %v1702_v43  ;;  %v1352_v13 = vpop.f32.mrb[6].mxu0 }
  0xf8   :  { %v298_v14 = vadd.f32 %v297_v11, %v1702_v43  ;;  %v1358_v15 = vpop.f32.mrb[6].mxu1  ;;  %v252_v16 = vmax.f32 %v244_v8, 0.0  ;;  %v247_v17 = vadd.f32 %v1352_v13, %v1704_v44  ;;  %v238_v18 = vpop.f32.mrb[7].mxu0 }
  0xf9   :  { %v579_v19 = vld [vmem:[#allocation2 + $0x30] sm:$0xff]  ;;  %v314_v20 = vmax.f32 %v306_v10, 0.0  ;;  %v309_v21 = vadd.f32 %v1358_v15, %v1704_v44  ;;  %v300_v22 = vpop.f32.mrb[7].mxu1  ;;  %v250_v23 = vmax.f32 %v236_v12, 0.0  ;;  %v239_v24 = vadd.f32 %v238_v18, %v1706_v46 }
  0xfa   :  { %584 = vst.msk [vmem:[#allocation2 + $0x130] sm:$0xff] %vm130_vm2, %v579_v19  ;;  %v577_v25 = vld [vmem:[#allocation2 + $0x20] sm:$0xff]  ;;  %v312_v26 = vmax.f32 %v298_v14, 0.0  ;;  %v301_v27 = vadd.f32 %v300_v22, %v1706_v46  ;;  %257 = vst.msk [vmem:[#allocation2 + $0x70] sm:$0xff] %vm130_vm2, %v252_v16  ;;  %v253_v28 = vmax.f32 %v247_v17, 0.0  ;;  %v700_v11 = vld [vmem:[#allocation2 + $0x50] sm:$0xff] }
  0xfb   :  { %582 = vst.msk [vmem:[#allocation2 + $0x120] sm:$0xff] %vm130_vm2, %v577_v25  ;;  %v580_v29 = vld [vmem:[#allocation2 + $0x38] sm:$0xff]  ;;  %319 = vst.msk [vmem:[#allocation2 + $0x90] sm:$0xff] %vm130_vm2, %v314_v20  ;;  %v315_v30 = vmax.f32 %v309_v21, 0.0  ;;  %v251_v31 = vmax.f32 %v239_v24, 0.0  ;;  %v698_v63 = vld [vmem:[#allocation2 + $0x40] sm:$0xff] }
  0xfc   :  { %255 = vst.msk [vmem:[#allocation2 + $0x60] sm:$0xff] %vm130_vm2, %v250_v23  ;;  %585 = vst.msk [vmem:[#allocation2 + $0x138] sm:$0xff] %vm130_vm2, %v580_v29  ;;  %v578_v32 = vld [vmem:[#allocation2 + $0x28] sm:$0xff]  ;;  %v313_v33 = vmax.f32 %v301_v27, 0.0  ;;  %v1745_v36 = vpack.c.bf16 %v580_v29, %v579_v19  ;;  %v701_v4 = vld [vmem:[#allocation2 + $0x58] sm:$0xff] }
  0xfd   :  { %317 = vst.msk [vmem:[#allocation2 + $0x80] sm:$0xff] %vm130_vm2, %v312_v26  ;;  %258 = vst.msk [vmem:[#allocation2 + $0x78] sm:$0xff] %vm130_vm2, %v253_v28  ;;  %v1742_v34 = vpack.c.bf16 %v578_v32, %v577_v25  ;;  %v1363_v35 = vpop.f32.mrb[8].mxu0  ;;  %v699_v54 = vld [vmem:[#allocation2 + $0x48] sm:$0xff]  ;;  %v1774_v16 = vpack.c.bf16 %v701_v4, %v700_v11 }
  0xfe   :  { %583 = vst.msk [vmem:[#allocation2 + $0x128] sm:$0xff] %vm130_vm2, %v578_v32  ;;  %320 = vst.msk [vmem:[#allocation2 + $0x98] sm:$0xff] %vm130_vm2, %v315_v30  ;;  %v1369_v37 = vpop.f32.mrb[8].mxu1  ;;  %v368_v38 = vadd.f32 %v1363_v35, %v1700_v42  ;;  %v359_v39 = vpop.f32.mrb[9].mxu0  ;;  %v1762_v2 = vpack.c.bf16 %v699_v54, %v698_v63  ;;  %v589_v35 = vld [vmem:[%s2014_s3 + $0x18] sm:$0xff] }
  0xff   :  { %256 = vst.msk [vmem:[#allocation2 + $0x68] sm:$0xff] %vm130_vm2, %v251_v31  ;;  %318 = vst.msk [vmem:[#allocation2 + $0x88] sm:$0xff] %vm130_vm2, %v313_v33  ;;  %v430_v40 = vadd.f32 %v1369_v37, %v1700_v42  ;;  %v421_v45 = vpop.f32.mrb[9].mxu1  ;;  %1399 = vmatprep.subr.bf16.mxu1 %v1742_v34  ;;  %v360_v47 = vadd.f32 %v359_v39, %v1702_v43  ;;  %v1364_v48 = vpop.f32.mrb[10].mxu0  ;;  %v588_v33 = vld [vmem:[%s2014_s3 + $0x10] sm:$0xff]  ;;  %s1570_s3 = smov [#allocation6]  }
 0x100   :  { %v422_v49 = vadd.f32 %v421_v45, %v1702_v43  ;;  %v1370_v50 = vpop.f32.mrb[10].mxu1  ;;  %1400 = vmatpush3.bf16.msra.mxu1 %v1742_v34  ;;  %v376_v51 = vmax.f32 %v368_v38, 0.0  ;;  %v371_v52 = vadd.f32 %v1364_v48, %v1704_v44  ;;  %v362_v53 = vpop.f32.mrb[11].mxu0  ;;  %v1811_v39 = vpack.c.bf16 %v589_v35, %v588_v33  ;;  %s1203_s11 = sshll.u32 %s1570_s3, 4  ;;  %s1204_s11 = int_to_ptr.vmem [resolvable:$true] %s1203_s11 }
 0x101   :  { %v438_v55 = vmax.f32 %v430_v40, 0.0  ;;  %v433_v56 = vadd.f32 %v1370_v50, %v1704_v44  ;;  %v424_v57 = vpop.f32.mrb[11].mxu1  ;;  %v374_v58 = vmax.f32 %v360_v47, 0.0  ;;  %1401 = vmatprep.subr.bf16.mxu1 %v1745_v36  ;;  %v363_v59 = vadd.f32 %v362_v53, %v1706_v46  ;;  %v704_v29 = vld [vmem:[#allocation2 + $0x70] sm:$0xff]  ;;  %s1540_s12 = scalar_lea.vmem %s1204_s11, 4096  ;;  %p1545_p9 = scmp.lt.s32.totalorder %s1204_s11, %s1204_s11 }
 0x102   :  { %v436_v60 = vmax.f32 %v422_v49, 0.0  ;;  %v425_v61 = vadd.f32 %v424_v57, %v1706_v46  ;;  %381 = vst.msk [vmem:[#allocation2 + $0xb0] sm:$0xff] %vm130_vm2, %v376_v51  ;;  %v377_v62 = vmax.f32 %v371_v52, 0.0  ;;  %p1541_p8 = scmp.ne.s32.totalorder %s1204_s11, %s1540_s12  ;;  %p1546_p10 = scmp.lt.s32.totalorder %s1540_s12, %s1540_s12 }
 0x103   :  { %443 = vst.msk [vmem:[#allocation2 + $0xd0] sm:$0xff] %vm130_vm2, %v438_v55  ;;  %v439_v0 = vmax.f32 %v433_v56, 0.0  ;;  %379 = vst.msk [vmem:[#allocation2 + $0xa0] sm:$0xff] %vm130_vm2, %v374_v58  ;;  %v375_v1 = vmax.f32 %v363_v59, 0.0  ;;  %v702_v6 = vld [vmem:[#allocation2 + $0x60] sm:$0xff]  ;;  %v844_v55 = vld [vmem:[#allocation2 + $0x90] sm:$0xff] }
 0x104   :  { %441 = vst.msk [vmem:[#allocation2 + $0xc0] sm:$0xff] %vm130_vm2, %v436_v60  ;;  %v437_v3 = vmax.f32 %v425_v61, 0.0  ;;  %382 = vst.msk [vmem:[#allocation2 + $0xb8] sm:$0xff] %vm130_vm2, %v377_v62  ;;  %1402 = vmatpush3.bf16.msra.mxu1 %v1745_v36  ;;  %v705_v30 = vld [vmem:[#allocation2 + $0x78] sm:$0xff]  ;;  %v842_v48 = vld [vmem:[#allocation2 + $0x80] sm:$0xff]  ;;  %p1547_p11 = por %p1546_p10, %p1545_p9 }
 0x105   :  { %444 = vst.msk [vmem:[#allocation2 + $0xd8] sm:$0xff] %vm130_vm2, %v439_v0  ;;  %380 = vst.msk [vmem:[#allocation2 + $0xa8] sm:$0xff] %vm130_vm2, %v375_v1  ;;  %v1375_v5 = vpop.f32.mrb[12].mxu0  ;;  %1403 = vmatprep.subr.bf16.mxu1 %v1762_v2  ;;  %v845_v50 = vld [vmem:[#allocation2 + $0x98] sm:$0xff] }
 0x106   :  { %v703_v7 = vld [vmem:[#allocation2 + $0x68] sm:$0xff]  ;;  %442 = vst.msk [vmem:[#allocation2 + $0xc8] sm:$0xff] %vm130_vm2, %v437_v3  ;;  %v492_v8 = vadd.f32 %v1375_v5, %v1700_v42  ;;  %v1381_v9 = vpop.f32.mrb[12].mxu1  ;;  %v483_v10 = vpop.f32.mrb[13].mxu0  ;;  %v1835_v57 = vpack.c.bf16 %v845_v50, %v844_v55  ;;  %p1548_p12 = pnand %p1547_p11, %p1541_p8 }
 0x107   :  { %v554_v12 = vadd.f32 %v1381_v9, %v1700_v42  ;;  %v484_v13 = vadd.f32 %v483_v10, %v1702_v43  ;;  %v545_v14 = vpop.f32.mrb[13].mxu1  ;;  %v1376_v15 = vpop.f32.mrb[14].mxu0  ;;  %v1779_v22 = vpack.c.bf16 %v703_v7, %v702_v6  ;;  %v843_v47 = vld [vmem:[#allocation2 + $0x88] sm:$0xff] }
 0x108   :  { %v500_v17 = vmax.f32 %v492_v8, 0.0  ;;  %v546_v18 = vadd.f32 %v545_v14, %v1702_v43  ;;  %v495_v19 = vadd.f32 %v1376_v15, %v1704_v44  ;;  %v1382_v20 = vpop.f32.mrb[14].mxu1  ;;  %v486_v21 = vpop.f32.mrb[15].mxu0  ;;  %1404 = vmatpush3.bf16.msra.mxu1 %v1762_v2  ;;  %v1831_v49 = vpack.c.bf16 %v843_v47, %v842_v48  ;;  %v1135_v14 = vld [vmem:[#allocation2 + $0x128] sm:$0xff] }
 0x109   :  { %v562_v23 = vmax.f32 %v554_v12, 0.0  ;;  %v498_v24 = vmax.f32 %v484_v13, 0.0  ;;  %v557_v42 = vadd.f32 %v1382_v20, %v1704_v44  ;;  %v487_v25 = vadd.f32 %v486_v21, %v1706_v46  ;;  %v548_v26 = vpop.f32.mrb[15].mxu1  ;;  %1405 = vmatprep.subr.bf16.mxu1 %v1774_v16  ;;  %v848_v62 = vld [vmem:[#allocation2 + $0xb0] sm:$0xff]  ;;  %v1134_v13 = vld [vmem:[#allocation2 + $0x120] sm:$0xff]  ;;  %v1926_v20 = vpop.permute.xlu1 %621 }
 0x10a   :  { %505 = vst.msk [vmem:[#allocation2 + $0xf0] sm:$0xff] %vm130_vm2, %v500_v17  ;;  %v560_v43 = vmax.f32 %v546_v18, 0.0  ;;  %v501_v27 = vmax.f32 %v495_v19, 0.0  ;;  %v549_v28 = vadd.f32 %v548_v26, %v1706_v46  ;;  %v1794_v46 = vpack.c.bf16 %v705_v30, %v704_v29  ;;  %v846_v59 = vld [vmem:[#allocation2 + $0xa0] sm:$0xff]  ;;  %v988_v4 = vld [vmem:[#allocation2 + $0xd0] sm:$0xff]  ;;  %v1137_v17 = vld [vmem:[#allocation2 + $0x138] sm:$0xff]  ;;  %v1924_v19 = vpop.permute.xlu0 %616 }
 0x10b   :  { %567 = vst.msk [vmem:[#allocation2 + $0x110] sm:$0xff] %vm130_vm2, %v562_v23  ;;  %503 = vst.msk [vmem:[#allocation2 + $0xe0] sm:$0xff] %vm130_vm2, %v498_v24  ;;  %v563_v31 = vmax.f32 %v557_v42, 0.0  ;;  %v499_v32 = vmax.f32 %v487_v25, 0.0  ;;  %v849_v63 = vld [vmem:[#allocation2 + $0xb8] sm:$0xff]  ;;  %v1142_v15 = vpack.c.bf16 %v1135_v14, %v1134_v13 }
 0x10c   :  { %565 = vst.msk [vmem:[#allocation2 + $0x100] sm:$0xff] %vm130_vm2, %v560_v43  ;;  %506 = vst.msk [vmem:[#allocation2 + $0xf8] sm:$0xff] %vm130_vm2, %v501_v27  ;;  %v561_v44 = vmax.f32 %v549_v28, 0.0  ;;  %1406 = vmatpush3.bf16.msra.mxu1 %v1774_v16  ;;  %v847_v60 = vld [vmem:[#allocation2 + $0xa8] sm:$0xff]  ;;  %v1844_v0 = vpack.c.bf16 %v849_v63, %v848_v62  ;;  %v989_v3 = vld [vmem:[#allocation2 + $0xd8] sm:$0xff] }
 0x10d   :  { %568 = vst.msk [vmem:[#allocation2 + $0x118] sm:$0xff] %vm130_vm2, %v563_v31  ;;  %504 = vst.msk [vmem:[#allocation2 + $0xe8] sm:$0xff] %vm130_vm2, %v499_v32  ;;  %1407 = vmatprep.subr.bf16.mxu1 %v1779_v22  ;;  %v1839_v61 = vpack.c.bf16 %v847_v60, %v846_v59  ;;  %v987_v1 = vld [vmem:[#allocation2 + $0xc8] sm:$0xff]  ;;  %v1868_v5 = vpack.c.bf16 %v989_v3, %v988_v4  ;;  %v1931_v24 = vpop.permute.xlu1 %631 }
 0x10e   :  { %566 = vst.msk [vmem:[#allocation2 + $0x108] sm:$0xff] %vm130_vm2, %v561_v44 }
 0x110   :  { %1408 = vmatpush3.bf16.msra.mxu1 %v1779_v22 }
 0x111   :  { %1409 = vmatprep.subr.bf16.mxu1 %v1794_v46  ;;  %v992_v9 = vld [vmem:[#allocation2 + $0xf0] sm:$0xff] }
 0x112   :  { %v1805_v37 = vld [vmem:[#allocation2 + $0x110] sm:$0xff]  ;;  %v990_v7 = vld [vmem:[#allocation2 + $0xe0] sm:$0xff] }
 0x113   :  { %575 = vst.msk [vmem:[#allocation2 + $0x10] sm:$0xff] %vm130_vm2, %v1805_v37  ;;  %v1809_v38 = vld [vmem:[#allocation2 + $0x100] sm:$0xff]  ;;  %v993_v10 = vld [vmem:[#allocation2 + $0xf8] sm:$0xff] }
 0x114   :  { %573 = vst.msk [vmem:[#allocation2] sm:$0xff] %vm130_vm2, %v1809_v38  ;;  %v1815_v40 = vld [vmem:[#allocation2 + $0x118] sm:$0xff]  ;;  %1410 = vmatpush3.bf16.msra.mxu1 %v1794_v46  ;;  %v991_v6 = vld [vmem:[#allocation2 + $0xe8] sm:$0xff]  ;;  %v999_v11 = vpack.c.bf16 %v993_v10, %v992_v9 }
 0x115   :  { %576 = vst.msk [vmem:[#allocation2 + $0x18] sm:$0xff] %vm130_vm2, %v1815_v40  ;;  %v1820_v45 = vld [vmem:[#allocation2 + $0x108] sm:$0xff]  ;;  %1431 = vmatprep.subr.bf16.mxu1 %v1779_v22  ;;  %v998_v8 = vpack.c.bf16 %v991_v6, %v990_v7  ;;  %v1141_v12 = vpack.c.bf16 %v1815_v40, %v1805_v37 }
 0x116   :  { %574 = vst.msk [vmem:[#allocation2 + $0x8] sm:$0xff] %vm130_vm2, %v1820_v45 }
 0x117   :  { %1412 = vmatmul.mubr.msk.bf16.vlgmr.msra.gmra.mrb[16].mxu1 %vm634_vm1, %v1811_v39 }
 0x118   :  { %1432 = vmatpush3.bf16.msra.mxu1 %v1779_v22  ;;  %1443 = vmatprep.mubr.msk.bf16.mxu1 %vm634_vm1, %v1694_v41 }
 0x119   :  { %1433 = vmatprep.subr.bf16.mxu1 %v1794_v46 }
 0x11a   :  { %v598_v56 = vld [vmem:[#allocation2 + $0x10] sm:$0xff] }
 0x11b   :  { %v596_v51 = vld [vmem:[#allocation2] sm:$0xff] }
 0x11c   :  { %1434 = vmatpush3.bf16.msra.mxu1 %v1794_v46  ;;  %v599_v53 = vld [vmem:[#allocation2 + $0x18] sm:$0xff] }
 0x11d   :  { %1435 = vmatprep.subr.bf16.mxu1 %v1831_v49  ;;  %v597_v52 = vld [vmem:[#allocation2 + $0x8] sm:$0xff]  ;;  %v609_v58 = vpack.c.bf16 %v599_v53, %v598_v56 }
 0x11e   :  { %v608_v54 = vpack.c.bf16 %v597_v52, %v596_v51 }
 0x120   :  { %1383 = vmatprep.subr.bf16.mxu0 %v608_v54  ;;  %1436 = vmatpush3.bf16.msra.mxu1 %v1831_v49 }
 0x121   :  { %1384 = vmatpush3.bf16.msra.mxu0 %v608_v54  ;;  %1437 = vmatprep.subr.bf16.mxu1 %v1835_v57 }
 0x122   :  { %1385 = vmatprep.subr.bf16.mxu0 %v609_v58 }
 0x124   :  { %1438 = vmatpush3.bf16.msra.mxu1 %v1835_v57 }
 0x125   :  { %1386 = vmatpush3.bf16.msra.mxu0 %v609_v58  ;;  %1439 = vmatprep.subr.bf16.mxu1 %v1839_v61 }
 0x126   :  { %1387 = vmatprep.subr.bf16.mxu0 %v1742_v34 }
 0x128   :  { %1440 = vmatpush3.bf16.msra.mxu1 %v1839_v61 }
 0x129   :  { %1388 = vmatpush3.bf16.msra.mxu0 %v1742_v34  ;;  %1441 = vmatprep.subr.bf16.mxu1 %v1844_v0  ;;  %v986_v34 = vld [vmem:[#allocation2 + $0xc0] sm:$0xff] }
 0x12a   :  { %1389 = vmatprep.subr.bf16.mxu0 %v1745_v36 }
 0x12c   :  { %1442 = vmatpush3.bf16.msra.mxu1 %v1844_v0 }
 0x12d   :  { %1390 = vmatpush3.bf16.msra.mxu0 %v1745_v36  ;;  %1463 = vmatprep.subr.bf16.mxu1 %v1839_v61  ;;  %v1862_v36 = vpack.c.bf16 %v987_v1, %v986_v34 }
 0x12e   :  { %1391 = vmatprep.subr.bf16.mxu0 %v1762_v2 }
 0x12f   :  { %1444 = vmatmul.mubr.msk.bf16.vlgmr.msra.gmra.mrb[20].mxu1 %vm634_vm1, %v1811_v39 }
 0x130   :  { %1464 = vmatpush3.bf16.msra.mxu1 %v1839_v61  ;;  %1475 = vmatprep.mubr.msk.bf16.mxu1 %vm634_vm1, %v1694_v41 }
 0x131   :  { %1392 = vmatpush3.bf16.msra.mxu0 %v1762_v2  ;;  %1465 = vmatprep.subr.bf16.mxu1 %v1844_v0 }
 0x132   :  { %1393 = vmatprep.subr.bf16.mxu0 %v1774_v16 }
 0x134   :  { %1466 = vmatpush3.bf16.msra.mxu1 %v1844_v0 }
 0x135   :  { %1394 = vmatpush3.bf16.msra.mxu0 %v1774_v16  ;;  %1467 = vmatprep.subr.bf16.mxu1 %v1862_v36 }
 0x136   :  { %1415 = vmatprep.subr.bf16.mxu0 %v1762_v2 }
 0x138   :  { %1396 = vmatmul.mubr.msk.bf16.vlgmr.msra.gmra.mrb[16].mxu0 %vm634_vm1, %v1811_v39  ;;  %1468 = vmatpush3.bf16.msra.mxu1 %v1862_v36 }
 0x139   :  { %1416 = vmatpush3.bf16.msra.mxu0 %v1762_v2  ;;  %1469 = vmatprep.subr.bf16.mxu1 %v1868_v5  ;;  %v1140_v2 = vpack.c.bf16 %v1820_v45, %v1809_v38 }
 0x13a   :  { %1417 = vmatprep.subr.bf16.mxu0 %v1774_v16  ;;  %1427 = vmatprep.mubr.msk.bf16.mxu0 %vm634_vm1, %v1694_v41 }
 0x13c   :  { %1470 = vmatpush3.bf16.msra.mxu1 %v1868_v5 }
 0x13d   :  { %1418 = vmatpush3.bf16.msra.mxu0 %v1774_v16  ;;  %1471 = vmatprep.subr.bf16.mxu1 %v998_v8  ;;  %v1136_v16 = vld [vmem:[#allocation2 + $0x130] sm:$0xff] }
 0x13e   :  { %1419 = vmatprep.subr.bf16.mxu0 %v1779_v22  ;;  %v1143_v18 = vpack.c.bf16 %v1137_v17, %v1136_v16 }
 0x140   :  { %1472 = vmatpush3.bf16.msra.mxu1 %v998_v8 }
 0x141   :  { %1420 = vmatpush3.bf16.msra.mxu0 %v1779_v22  ;;  %1473 = vmatprep.subr.bf16.mxu1 %v999_v11 }
 0x142   :  { %1421 = vmatprep.subr.bf16.mxu0 %v1794_v46 }
 0x144   :  { %1474 = vmatpush3.bf16.msra.mxu1 %v999_v11 }
 0x145   :  { %1422 = vmatpush3.bf16.msra.mxu0 %v1794_v46  ;;  %1495 = vmatprep.subr.bf16.mxu1 %v998_v8 }
 0x146   :  { %1423 = vmatprep.subr.bf16.mxu0 %v1831_v49 }
 0x147   :  { %1476 = vmatmul.mubr.msk.bf16.vlgmr.msra.gmra.mrb[24].mxu1 %vm634_vm1, %v1811_v39 }
 0x148   :  { %1496 = vmatpush3.bf16.msra.mxu1 %v998_v8  ;;  %1507 = vmatprep.mubr.msk.bf16.mxu1 %vm634_vm1, %v1694_v41 }
 0x149   :  { %1424 = vmatpush3.bf16.msra.mxu0 %v1831_v49  ;;  %1497 = vmatprep.subr.bf16.mxu1 %v999_v11 }
 0x14a   :  { %1425 = vmatprep.subr.bf16.mxu0 %v1835_v57 }
 0x14c   :  { %1498 = vmatpush3.bf16.msra.mxu1 %v999_v11 }
 0x14d   :  { %1426 = vmatpush3.bf16.msra.mxu0 %v1835_v57  ;;  %1499 = vmatprep.subr.bf16.mxu1 %v1140_v2 }
 0x14e   :  { %1447 = vmatprep.subr.bf16.mxu0 %v1831_v49 }
 0x150   :  { %1428 = vmatmul.mubr.msk.bf16.vlgmr.msra.gmra.mrb[20].mxu0 %vm634_vm1, %v1811_v39  ;;  %1500 = vmatpush3.bf16.msra.mxu1 %v1140_v2 }
 0x151   :  { %1448 = vmatpush3.bf16.msra.mxu0 %v1831_v49  ;;  %1501 = vmatprep.subr.bf16.mxu1 %v1141_v12 }
 0x152   :  { %1449 = vmatprep.subr.bf16.mxu0 %v1835_v57  ;;  %1459 = vmatprep.mubr.msk.bf16.mxu0 %vm634_vm1, %v1694_v41 }
 0x154   :  { %1502 = vmatpush3.bf16.msra.mxu1 %v1141_v12 }
 0x155   :  { %1450 = vmatpush3.bf16.msra.mxu0 %v1835_v57  ;;  %1503 = vmatprep.subr.bf16.mxu1 %v1142_v15 }
 0x156   :  { %1451 = vmatprep.subr.bf16.mxu0 %v1839_v61 }
 0x158   :  { %1504 = vmatpush3.bf16.msra.mxu1 %v1142_v15 }
 0x159   :  { %1452 = vmatpush3.bf16.msra.mxu0 %v1839_v61  ;;  %1505 = vmatprep.subr.bf16.mxu1 %v1143_v18 }
 0x15a   :  { %1453 = vmatprep.subr.bf16.mxu0 %v1844_v0 }
 0x15c   :  { %1506 = vmatpush3.bf16.msra.mxu1 %v1143_v18 }
 0x15d   :  { %1454 = vmatpush3.bf16.msra.mxu0 %v1844_v0 }
 0x15e   :  { %1455 = vmatprep.subr.bf16.mxu0 %v1862_v36 }
 0x15f   :  { %1508 = vmatmul.mubr.msk.bf16.vlgmr.msra.gmra.mrb[28].mxu1 %vm634_vm1, %v1811_v39 }
 0x161   :  { %1456 = vmatpush3.bf16.msra.mxu0 %v1862_v36 }
 0x162   :  { %1457 = vmatprep.subr.bf16.mxu0 %v1868_v5 }
 0x165   :  { %1458 = vmatpush3.bf16.msra.mxu0 %v1868_v5 }
 0x166   :  { %1479 = vmatprep.subr.bf16.mxu0 %v1862_v36 }
 0x168   :  { %1460 = vmatmul.mubr.msk.bf16.vlgmr.msra.gmra.mrb[24].mxu0 %vm634_vm1, %v1811_v39 }
 0x169   :  { %1480 = vmatpush3.bf16.msra.mxu0 %v1862_v36  ;;  %1491 = vmatprep.mubr.msk.bf16.mxu0 %vm634_vm1, %v1694_v41  ;;  %v1928_v41 = vpop.permute.xlu0 %626 }
 0x16a   :  { %1481 = vmatprep.subr.bf16.mxu0 %v1868_v5 }
 0x16d   :  { %1482 = vmatpush3.bf16.msra.mxu0 %v1868_v5 }
 0x16e   :  { %1483 = vmatprep.subr.bf16.mxu0 %v998_v8 }
 0x171   :  { %1484 = vmatpush3.bf16.msra.mxu0 %v998_v8 }
 0x172   :  { %1485 = vmatprep.subr.bf16.mxu0 %v999_v11 }
 0x175   :  { %1486 = vmatpush3.bf16.msra.mxu0 %v999_v11 }
 0x176   :  { %1487 = vmatprep.subr.bf16.mxu0 %v1140_v2 }
 0x179   :  { %1488 = vmatpush3.bf16.msra.mxu0 %v1140_v2 }
 0x17a   :  { %1489 = vmatprep.subr.bf16.mxu0 %v1141_v12 }
 0x17d   :  { %1490 = vmatpush3.bf16.msra.mxu0 %v1141_v12 }
 0x180   :  { %1492 = vmatmul.mubr.msk.bf16.vlgmr.msra.gmra.mrb[28].mxu0 %vm634_vm1, %v1811_v39 }
 0x1ea   :  { %v1413_v21 = vpop.f32.mrb[16].mxu1 }
 0x1eb   :  { %v755_v22 = vadd.f32 %v1413_v21, %v1928_v41  ;;  %v746_v23 = vpop.f32.mrb[17].mxu1 }
 0x1ec   :  { %v747_v42 = vadd.f32 %v746_v23, %v1924_v19  ;;  %v1414_v25 = vpop.f32.mrb[18].mxu1 }
 0x1ed   :  { %764 = vst.msk [vmem:[#allocation6 + $0x30] sm:$0xff] %vm130_vm2, %v755_v22  ;;  %v758_v26 = vadd.f32 %v1414_v25, %v1931_v24  ;;  %v749_v43 = vpop.f32.mrb[19].mxu1 }
 0x1ee   :  { %762 = vst.msk [vmem:[#allocation6 + $0x20] sm:$0xff] %vm130_vm2, %v747_v42  ;;  %v750_v27 = vadd.f32 %v749_v43, %v1926_v20 }
 0x1ef   :  { %765 = vst.msk [vmem:[#allocation6 + $0x38] sm:$0xff] %vm130_vm2, %v758_v26 }
 0x1f0   :  { %763 = vst.msk [vmem:[#allocation6 + $0x28] sm:$0xff] %vm130_vm2, %v750_v27 }
 0x202   :  { %v1445_v28 = vpop.f32.mrb[20].mxu1 }
 0x203   :  { %v899_v29 = vadd.f32 %v1445_v28, %v1928_v41  ;;  %v890_v30 = vpop.f32.mrb[21].mxu1 }
 0x204   :  { %v891_v31 = vadd.f32 %v890_v30, %v1924_v19  ;;  %v1446_v32 = vpop.f32.mrb[22].mxu1 }
 0x205   :  { %908 = vst.msk [vmem:[#allocation6 + $0x70] sm:$0xff] %vm130_vm2, %v899_v29  ;;  %v902_v44 = vadd.f32 %v1446_v32, %v1931_v24  ;;  %v893_v46 = vpop.f32.mrb[23].mxu1 }
 0x206   :  { %906 = vst.msk [vmem:[#allocation6 + $0x60] sm:$0xff] %vm130_vm2, %v891_v31  ;;  %v894_v33 = vadd.f32 %v893_v46, %v1926_v20 }
 0x207   :  { %909 = vst.msk [vmem:[#allocation6 + $0x78] sm:$0xff] %vm130_vm2, %v902_v44 }
 0x208   :  { %907 = vst.msk [vmem:[#allocation6 + $0x68] sm:$0xff] %vm130_vm2, %v894_v33 }
 0x20b   :  { %v1397_v35 = vpop.f32.mrb[16].mxu0 }
 0x20c   :  { %v684_v37 = vadd.f32 %v1397_v35, %v1928_v41  ;;  %v675_v38 = vpop.f32.mrb[17].mxu0 }
 0x20d   :  { %v676_v39 = vadd.f32 %v675_v38, %v1924_v19  ;;  %v1398_v40 = vpop.f32.mrb[18].mxu0 }
 0x20e   :  { %692 = vst.msk [vmem:[#allocation6 + $0x10] sm:$0xff] %vm130_vm2, %v684_v37  ;;  %v687_v45 = vadd.f32 %v1398_v40, %v1931_v24  ;;  %v678_v47 = vpop.f32.mrb[19].mxu0 }
 0x20f   :  { %690 = vst.msk [vmem:[#allocation6] sm:$0xff] %vm130_vm2, %v676_v39  ;;  %v679_v48 = vadd.f32 %v678_v47, %v1926_v20 }
 0x210   :  { %693 = vst.msk [vmem:[#allocation6 + $0x18] sm:$0xff] %vm130_vm2, %v687_v45 }
 0x211   :  { %691 = vst.msk [vmem:[#allocation6 + $0x8] sm:$0xff] %vm130_vm2, %v679_v48 }
 0x21a   :  { %v1477_v49 = vpop.f32.mrb[24].mxu1 }
 0x21b   :  { %v1043_v50 = vadd.f32 %v1477_v49, %v1928_v41  ;;  %v1034_v51 = vpop.f32.mrb[25].mxu1 }
 0x21c   :  { %v1035_v52 = vadd.f32 %v1034_v51, %v1924_v19  ;;  %v1478_v53 = vpop.f32.mrb[26].mxu1 }
 0x21d   :  { %1052 = vst.msk [vmem:[#allocation6 + $0xb0] sm:$0xff] %vm130_vm2, %v1043_v50  ;;  %v1046_v54 = vadd.f32 %v1478_v53, %v1931_v24  ;;  %v1037_v55 = vpop.f32.mrb[27].mxu1 }
 0x21e   :  { %1050 = vst.msk [vmem:[#allocation6 + $0xa0] sm:$0xff] %vm130_vm2, %v1035_v52  ;;  %v1038_v56 = vadd.f32 %v1037_v55, %v1926_v20 }
 0x21f   :  { %1053 = vst.msk [vmem:[#allocation6 + $0xb8] sm:$0xff] %vm130_vm2, %v1046_v54 }
 0x220   :  { %1051 = vst.msk [vmem:[#allocation6 + $0xa8] sm:$0xff] %vm130_vm2, %v1038_v56 }
 0x223   :  { %v1429_v57 = vpop.f32.mrb[20].mxu0 }
 0x224   :  { %v827_v58 = vadd.f32 %v1429_v57, %v1928_v41  ;;  %v818_v59 = vpop.f32.mrb[21].mxu0 }
 0x225   :  { %v819_v60 = vadd.f32 %v818_v59, %v1924_v19  ;;  %v1430_v61 = vpop.f32.mrb[22].mxu0 }
 0x226   :  { %836 = vst.msk [vmem:[#allocation6 + $0x50] sm:$0xff] %vm130_vm2, %v827_v58  ;;  %v830_v62 = vadd.f32 %v1430_v61, %v1931_v24  ;;  %v821_v63 = vpop.f32.mrb[23].mxu0 }
 0x227   :  { %834 = vst.msk [vmem:[#allocation6 + $0x40] sm:$0xff] %vm130_vm2, %v819_v60  ;;  %v822_v0 = vadd.f32 %v821_v63, %v1926_v20 }
 0x228   :  { %837 = vst.msk [vmem:[#allocation6 + $0x58] sm:$0xff] %vm130_vm2, %v830_v62 }
 0x229   :  { %835 = vst.msk [vmem:[#allocation6 + $0x48] sm:$0xff] %vm130_vm2, %v822_v0 }
 0x232   :  { %v1509_v1 = vpop.f32.mrb[28].mxu1 }
 0x233   :  { %v1187_v34 = vadd.f32 %v1509_v1, %v1928_v41  ;;  %v1178_v36 = vpop.f32.mrb[29].mxu1 }
 0x234   :  { %v1179_v3 = vadd.f32 %v1178_v36, %v1924_v19  ;;  %v1510_v4 = vpop.f32.mrb[30].mxu1 }
 0x235   :  { %1196 = vst.msk [vmem:[#allocation6 + $0xf0] sm:$0xff] %vm130_vm2, %v1187_v34  ;;  %v1190_v5 = vadd.f32 %v1510_v4, %v1931_v24  ;;  %v1181_v6 = vpop.f32.mrb[31].mxu1 }
 0x236   :  { %1194 = vst.msk [vmem:[#allocation6 + $0xe0] sm:$0xff] %vm130_vm2, %v1179_v3  ;;  %v1182_v7 = vadd.f32 %v1181_v6, %v1926_v20 }
 0x237   :  { %1197 = vst.msk [vmem:[#allocation6 + $0xf8] sm:$0xff] %vm130_vm2, %v1190_v5 }
 0x238   :  { %1195 = vst.msk [vmem:[#allocation6 + $0xe8] sm:$0xff] %vm130_vm2, %v1182_v7 }
 0x23b   :  { %v1461_v8 = vpop.f32.mrb[24].mxu0 }
 0x23c   :  { %v971_v9 = vadd.f32 %v1461_v8, %v1928_v41  ;;  %v962_v10 = vpop.f32.mrb[25].mxu0 }
 0x23d   :  { %v963_v11 = vadd.f32 %v962_v10, %v1924_v19  ;;  %v1462_v2 = vpop.f32.mrb[26].mxu0 }
 0x23e   :  { %980 = vst.msk [vmem:[#allocation6 + $0x90] sm:$0xff] %vm130_vm2, %v971_v9  ;;  %v974_v12 = vadd.f32 %v1462_v2, %v1931_v24  ;;  %v965_v13 = vpop.f32.mrb[27].mxu0 }
 0x23f   :  { %978 = vst.msk [vmem:[#allocation6 + $0x80] sm:$0xff] %vm130_vm2, %v963_v11  ;;  %v966_v14 = vadd.f32 %v965_v13, %v1926_v20 }
 0x240   :  { %981 = vst.msk [vmem:[#allocation6 + $0x98] sm:$0xff] %vm130_vm2, %v974_v12 }
 0x241   :  { %979 = vst.msk [vmem:[#allocation6 + $0x88] sm:$0xff] %vm130_vm2, %v966_v14 }
 0x253   :  { %v1493_v15 = vpop.f32.mrb[28].mxu0 }
 0x254   :  { %v1115_v16 = vadd.f32 %v1493_v15, %v1928_v41  ;;  %v1106_v17 = vpop.f32.mrb[29].mxu0 }
 0x255   :  { %v1107_v18 = vadd.f32 %v1106_v17, %v1924_v19  ;;  %v1494_v21 = vpop.f32.mrb[30].mxu0 }
 0x256   :  { %1124 = vst.msk [vmem:[#allocation6 + $0xd0] sm:$0xff] %vm130_vm2, %v1115_v16  ;;  %v1118_v22 = vadd.f32 %v1494_v21, %v1931_v24  ;;  %v1109_v23 = vpop.f32.mrb[31].mxu0 }
 0x257   :  { %1122 = vst.msk [vmem:[#allocation6 + $0xc0] sm:$0xff] %vm130_vm2, %v1107_v18  ;;  %v1110_v42 = vadd.f32 %v1109_v23, %v1926_v20 }
 0x258   :  { %1125 = vst.msk [vmem:[#allocation6 + $0xd8] sm:$0xff] %vm130_vm2, %v1118_v22 }
 0x259   :  { %1123 = vst.msk [vmem:[#allocation6 + $0xc8] sm:$0xff] %vm130_vm2, %v1110_v42 }
 0x25a   :  { %1551 = shalt.err (!%p1548_p12)
}
 0x25b   :  { %s1552_s14 = scalar_lea.hbm %s2016_s5, 4096 }
 0x25c   :  { %p1553_p13 = scmp.ne.s32.totalorder %s2016_s5, %s1552_s14  ;;  %p1556_p0 = scmp.lt.u32.totalorder %s1552_s14, %s2016_s5 }
 0x25e   :  { %p1558_p1 = pnand %p1556_p0, %p1553_p13 }
 0x260   :  { %1561 = shalt.err (!%p1558_p1)
}
 0x261   :  { %1209 = dma.vmem_to_hbm [thread:$0]  %s1204_s11, 4096, %s2016_s5, [#allocation5], %s1567_s28, %s1567_s28, %s1568_s29  }
 0x262   :  { %1564 = dma.done.wait [#allocation5], 4096  }
 0x263   :  { %1565 = vsyncadd [#allocation5], 4294963200 }
 0x264   :  { %1213 = vsyncpa [#allocation4], 1 }
 0x265   :  { %1214 = vsyncpa [#allocation5], 1 }

</bundles_post_ra>
